<compile_context>
chip_gen: v5e
topology: v5e:2x2
jax: 0.10.0
libtpu: 0.0.40
codegen_flags: <defaults>
</compile_context>

<pallas_src>
import functools
import math

import jax
import jax.numpy as jnp
from jax.experimental import pallas as pl
from jax.experimental.pallas import tpu as pltpu


def _rle_kernel(
    obs_ref,
    w1_ref, b1_ref, w2_ref, b2_ref, w3_ref, b3_ref, w4_ref, b4_ref,
    inv_std_ref, mean_scaled_ref,
    raw_ref, feat_ref,
    *, bf16_tanh,
):
    # rle_net: Linear -> Tanh -> Linear -> Tanh -> Linear -> Tanh, then last_layer.
    # Matmul operands are bf16 (MXU-native); accumulation / bias add stay f32.
    def dense_tanh(h, w_ref, b_ref):
        acc = jnp.dot(h, w_ref[...], preferred_element_type=jnp.float32) + b_ref[...]
        if bf16_tanh:
            # bf16 EUP tanh (v6e/v7x): ~2x EUP throughput, no extra f32->bf16 pack.
            return jnp.tanh(acc.astype(jnp.bfloat16))
        # v5e and older: no bf16 EUP path -> f32 tanh, then cast for the next MXU op.
        return jnp.tanh(acc).astype(jnp.bfloat16)

    h = dense_tanh(obs_ref[...], w1_ref, b1_ref)   # (tb, 512)
    h = dense_tanh(h, w2_ref, b2_ref)              # (tb, 512)
    h = dense_tanh(h, w3_ref, b3_ref)              # (tb, 256)

    # last_layer (feature axis optionally zero-padded upstream for lane density).
    raw = jnp.dot(h, w4_ref[...], preferred_element_type=jnp.float32) + b4_ref[...]

    # rle_feat = (raw - mean) / (std + 1e-5), with exact f32 constants hoisted to
    # the wrapper: feat = raw * inv_std - mean*inv_std.
    feat = raw * inv_std_ref[...] - mean_scaled_ref[...]

    raw_ref[...] = raw
    feat_ref[...] = feat


def _choose_batch_tile(batch):
    """Batch-tile policy: see module docstring."""
    if batch <= 256:
        return batch                       # single tile; weight-DMA-bound regime
    half = -(-batch // 2)                  # >= 2 grid steps -> both v7x TCs busy
    return min(512, ((half + 7) // 8) * 8)  # rows multiple of 8, cap 512


def _bf16_tanh_ok():
    """bf16 tanh only where the EUP has a bf16 path (v6e / v7x and newer)."""
    try:
        kind = jax.devices()[0].device_kind.lower()
    except Exception:
        return True
    return not any(v in kind for v in ("v2", "v3", "v4", "v5"))


@functools.partial(jax.jit, static_argnames=("batch_tile",))
def compute_rle_feat(obs, goals, params, rle_feat_mean, rle_feat_std, *, batch_tile=None):
    """Pallas equivalent of RLEModel.compute_rle_feat.

    obs:   (B, obs_dim) float32
    goals: (B, feature_size) float32
    returns (reward (B,), raw_rle_feat (B, F), rle_feat (B, F))
    """
    w1, b1, w2, b2, w3, b3, w4, b4 = params
    B, obs_dim = obs.shape
    h1, h2, h3 = w1.shape[1], w2.shape[1], w3.shape[1]
    feat_size = w4.shape[1]

    # Final-layer compute/store width. Lane-dense (128-padded, unmasked stores)
    # only if the padding costs < 2x extra writeback; else store at true width.
    f_pad = ((feat_size + 127) // 128) * 128
    f_out = f_pad if 2 * feat_size >= f_pad else feat_size

    tb = _choose_batch_tile(B) if batch_tile is None else int(batch_tile)
    steps = -(-B // tb)
    b_pad = steps * tb

    # bf16 matmul operands (halves obs/weight DMA; MXU-native). Biases/stats f32.
    obs_b = obs.astype(jnp.bfloat16)
    if b_pad != B:
        obs_b = jnp.pad(obs_b, ((0, b_pad - B), (0, 0)))   # ragged batch: pad rows
    w1_b = w1.astype(jnp.bfloat16)
    w2_b = w2.astype(jnp.bfloat16)
    w3_b = w3.astype(jnp.bfloat16)

    pad_f = ((0, 0), (0, f_out - feat_size))
    w4_b = jnp.pad(w4, pad_f).astype(jnp.bfloat16)
    b4_p = jnp.pad(b4, pad_f)
    # Exact f32 normalization constants hoisted out of the kernel.
    inv_std = 1.0 / (rle_feat_std.astype(jnp.float32) + 1e-5)
    mean_scaled = rle_feat_mean.astype(jnp.float32) * inv_std
    inv_std_p = jnp.pad(inv_std, pad_f, constant_values=1.0)
    mean_scaled_p = jnp.pad(mean_scaled, pad_f)

    def _resident(shape):
        # Constant block index -> fetched once, stays resident in VMEM across steps.
        # TODO(synk): pipeline_mode=pl.Buffered(1) would drop the double buffer on
        # these (~1 MiB VMEM); left at the default for maximal lowering portability.
        return pl.BlockSpec(shape, lambda i: (0,) * len(shape))

    in_specs = [
        pl.BlockSpec((tb, obs_dim), lambda i: (i, 0)),     # obs (bf16), streamed
        _resident((obs_dim, h1)), _resident((1, h1)),
        _resident((h1, h2)), _resident((1, h2)),
        _resident((h2, h3)), _resident((1, h3)),
        _resident((h3, f_out)), _resident((1, f_out)),
        _resident((1, f_out)),                             # inv_std
        _resident((1, f_out)),                             # mean * inv_std
    ]
    out_specs = (
        pl.BlockSpec((tb, f_out), lambda i: (i, 0)),       # raw_rle_feat
        pl.BlockSpec((tb, f_out), lambda i: (i, 0)),       # rle_feat
    )
    out_shape = (
        jax.ShapeDtypeStruct((b_pad, f_out), jnp.float32),
        jax.ShapeDtypeStruct((b_pad, f_out), jnp.float32),
    )

    weight_elems = obs_dim * h1 + h1 * h2 + h2 * h3 + h3 * f_out
    cost = pl.CostEstimate(
        flops=2 * b_pad * weight_elems,
        transcendentals=b_pad * (h1 + h2 + h3),
        bytes_accessed=(b_pad * obs_dim * 2                 # obs bf16
                        + weight_elems * 2                  # weights bf16
                        + (h1 + h2 + h3 + 3 * f_out) * 4    # biases + stats f32
                        + 2 * b_pad * f_out * 4),           # raw + feat f32
    )

    raw_p, feat_p = pl.pallas_call(
        functools.partial(_rle_kernel, bf16_tanh=_bf16_tanh_ok()),
        out_shape=out_shape,
        grid=(steps,),
        in_specs=in_specs,
        out_specs=out_specs,
        compiler_params=pltpu.CompilerParams(
            dimension_semantics=("parallel",),
        ),
        cost_estimate=cost,
    )(obs_b, w1_b, b1, w2_b, b2, w3_b, b3, w4_b, b4_p, inv_std_p, mean_scaled_p)

    raw = raw_p[:B, :feat_size]
    feat = feat_p[:B, :feat_size]
    # reward = (rle_feat * goals).sum(1): tiny XLA reduction over (B, F) done here
    # instead of a 128x-amplified broadcast store inside the kernel.
    reward = jnp.sum(feat * goals.astype(jnp.float32), axis=1)
    return reward, raw, feat


def _orthogonal(key, shape, gain):
    """torch.nn.init.orthogonal_ equivalent (deterministic given key)."""
    init = jax.nn.initializers.orthogonal(scale=gain)
    return init(key, shape, jnp.float32)


def make_params(key, obs_dim, feature_size):
    gain = math.sqrt(2.0)
    k1, k2, k3, k4 = jax.random.split(key, 4)
    # stored as (in, out) = transpose of torch's (out, in); same math in kernel.
    w1 = _orthogonal(k1, (obs_dim, 512), gain)
    w2 = _orthogonal(k2, (512, 512), gain)
    w3 = _orthogonal(k3, (512, 256), gain)
    w4 = _orthogonal(k4, (256, feature_size), gain)
    b1 = jnp.zeros((1, 512), jnp.float32)
    b2 = jnp.zeros((1, 512), jnp.float32)
    b3 = jnp.zeros((1, 256), jnp.float32)
    b4 = jnp.zeros((1, feature_size), jnp.float32)
    return (w1, b1, w2, b2, w3, b3, w4, b4)


def _reference(obs, goals, params, mean, std):
    w1, b1, w2, b2, w3, b3, w4, b4 = params
    h = jnp.tanh(obs @ w1 + b1)
    h = jnp.tanh(h @ w2 + b2)
    h = jnp.tanh(h @ w3 + b3)
    raw = h @ w4 + b4
    feat = (raw - mean) / (std + 1e-5)
    reward = (feat * goals).sum(axis=1)
    return reward, raw, feat


if __name__ == "__main__":
    key = jax.random.PRNGKey(0)
    k_params, k_obs, k_goals, k_mean, k_std = jax.random.split(key, 5)

    batch = 8          # num_envs
    obs_dim = 32       # prod(single_observation_space.shape)
    feature_size = 8

    params = make_params(k_params, obs_dim, feature_size)
    # Non-trivial RunningMeanStd statistics so the normalization path is exercised.
    rle_feat_mean = 0.1 * jax.random.normal(k_mean, (1, feature_size), jnp.float32)
    rle_feat_std = 0.5 + jax.random.uniform(k_std, (1, feature_size), jnp.float32)

    obs = jax.random.normal(k_obs, (batch, obs_dim), jnp.float32)
    goals = jax.random.normal(k_goals, (batch, feature_size), jnp.float32)

    reward, raw_feat, rle_feat = compute_rle_feat(
        obs, goals, params, rle_feat_mean, rle_feat_std
    )
    jax.block_until_ready((reward, raw_feat, rle_feat))

    # Sanity check against pure-JAX f32 reference. Tolerance is loosened for the
    # deliberately-bf16 matmul operands / bf16 tanh (acceptable for an RL reward
    # feature net); values are O(1), so a real bug would be off by far more.
    r_ref, raw_ref, feat_ref = _reference(obs, goals, params, rle_feat_mean, rle_feat_std)
    assert reward.shape == (batch,)
    assert raw_feat.shape == (batch, feature_size)
    assert rle_feat.shape == (batch, feature_size)
    assert jnp.allclose(reward, r_ref, atol=1e-1, rtol=5e-2)
    assert jnp.allclose(raw_feat, raw_ref, atol=1e-1, rtol=5e-2)
    assert jnp.allclose(rle_feat, feat_ref, atol=1e-1, rtol=5e-2)

    # TODO(synk): forward() in the PyTorch module is `pass`; the implemented hot
    # path is compute_rle_feat (used by compute_reward). Stateful goal switching
    # (step / sample_goals / update_rms) is host-side bookkeeping, not kernel work.
    print("KERNEL_OK")
</pallas_src>

<mosaic_0001>
module attributes {stable_mosaic.version = 11 : i64} {
  func.func @_rle_kernel(%arg0: i32, %arg1: memref<8x32xbf16, #tpu.memory_space<vmem>>, %arg2: memref<32x512xbf16, #tpu.memory_space<vmem>>, %arg3: memref<1x512xf32, #tpu.memory_space<vmem>>, %arg4: memref<512x512xbf16, #tpu.memory_space<vmem>>, %arg5: memref<1x512xf32, #tpu.memory_space<vmem>>, %arg6: memref<512x256xbf16, #tpu.memory_space<vmem>>, %arg7: memref<1x256xf32, #tpu.memory_space<vmem>>, %arg8: memref<256x8xbf16, #tpu.memory_space<vmem>>, %arg9: memref<1x8xf32, #tpu.memory_space<vmem>>, %arg10: memref<1x8xf32, #tpu.memory_space<vmem>>, %arg11: memref<1x8xf32, #tpu.memory_space<vmem>>, %arg12: memref<8x8xf32, #tpu.memory_space<vmem>>, %arg13: memref<8x8xf32, #tpu.memory_space<vmem>>) attributes {dimension_semantics = [#tpu.dimension_semantics<parallel>], iteration_bounds = array<i64: 1>, scalar_prefetch = 0 : i64, scratch_operands = 0 : i64, tpu.core_type = #tpu.core_type<tc>, window_params = [{transform_indices = @transform_0, window_bounds = array<i64: 8, 32>}, {pipeline_mode = #tpu.pipeline_mode<synchronous>, transform_indices = @transform_1, window_bounds = array<i64: 32, 512>}, {pipeline_mode = #tpu.pipeline_mode<synchronous>, transform_indices = @transform_2, window_bounds = array<i64: 1, 512>}, {pipeline_mode = #tpu.pipeline_mode<synchronous>, transform_indices = @transform_3, window_bounds = array<i64: 512, 512>}, {pipeline_mode = #tpu.pipeline_mode<synchronous>, transform_indices = @transform_4, window_bounds = array<i64: 1, 512>}, {pipeline_mode = #tpu.pipeline_mode<synchronous>, transform_indices = @transform_5, window_bounds = array<i64: 512, 256>}, {pipeline_mode = #tpu.pipeline_mode<synchronous>, transform_indices = @transform_6, window_bounds = array<i64: 1, 256>}, {pipeline_mode = #tpu.pipeline_mode<synchronous>, transform_indices = @transform_7, window_bounds = array<i64: 256, 8>}, {pipeline_mode = #tpu.pipeline_mode<synchronous>, transform_indices = @transform_8, window_bounds = array<i64: 1, 8>}, {pipeline_mode = #tpu.pipeline_mode<synchronous>, transform_indices = @transform_9, window_bounds = array<i64: 1, 8>}, {pipeline_mode = #tpu.pipeline_mode<synchronous>, transform_indices = @transform_10, window_bounds = array<i64: 1, 8>}, {transform_indices = @transform_11, window_bounds = array<i64: 8, 8>}, {transform_indices = @transform_12, window_bounds = array<i64: 8, 8>}]} {
    %c0 = arith.constant 0 : index
    %c0_0 = arith.constant 0 : index
    %0 = vector.load %arg1[%c0, %c0_0] : memref<8x32xbf16, #tpu.memory_space<vmem>>, vector<8x32xbf16>
    %c0_1 = arith.constant 0 : index
    %c0_2 = arith.constant 0 : index
    %1 = vector.load %arg2[%c0_1, %c0_2] : memref<32x512xbf16, #tpu.memory_space<vmem>>, vector<32x512xbf16>
    %cst = arith.constant dense<0.000000e+00> : vector<8x512xf32>
    %2 = tpu.matmul %0, %1, %cst {dimension_numbers = #tpu.dot_dimension_numbers<[1], [0], [0], [1], [0, 0, 1, 1], [], []>} : vector<8x32xbf16>, vector<32x512xbf16>, vector<8x512xf32> -> vector<8x512xf32>
    %c0_3 = arith.constant 0 : index
    %c0_4 = arith.constant 0 : index
    %3 = vector.load %arg3[%c0_3, %c0_4] : memref<1x512xf32, #tpu.memory_space<vmem>>, vector<1x512xf32>
    %4 = vector.broadcast %3 : vector<1x512xf32> to vector<8x512xf32>
    %5 = arith.addf %2, %4 : vector<8x512xf32>
    %6 = arith.truncf %5 : vector<8x512xf32> to vector<8x512xbf16>
    %7 = math.tanh %6 : vector<8x512xbf16>
    %c0_5 = arith.constant 0 : index
    %c0_6 = arith.constant 0 : index
    %8 = vector.load %arg4[%c0_5, %c0_6] : memref<512x512xbf16, #tpu.memory_space<vmem>>, vector<512x512xbf16>
    %cst_7 = arith.constant dense<0.000000e+00> : vector<8x512xf32>
    %9 = tpu.matmul %7, %8, %cst_7 {dimension_numbers = #tpu.dot_dimension_numbers<[1], [0], [0], [1], [0, 0, 1, 1], [], []>} : vector<8x512xbf16>, vector<512x512xbf16>, vector<8x512xf32> -> vector<8x512xf32>
    %c0_8 = arith.constant 0 : index
    %c0_9 = arith.constant 0 : index
    %10 = vector.load %arg5[%c0_8, %c0_9] : memref<1x512xf32, #tpu.memory_space<vmem>>, vector<1x512xf32>
    %11 = vector.broadcast %10 : vector<1x512xf32> to vector<8x512xf32>
    %12 = arith.addf %9, %11 : vector<8x512xf32>
    %13 = arith.truncf %12 : vector<8x512xf32> to vector<8x512xbf16>
    %14 = math.tanh %13 : vector<8x512xbf16>
    %c0_10 = arith.constant 0 : index
    %c0_11 = arith.constant 0 : index
    %15 = vector.load %arg6[%c0_10, %c0_11] : memref<512x256xbf16, #tpu.memory_space<vmem>>, vector<512x256xbf16>
    %cst_12 = arith.constant dense<0.000000e+00> : vector<8x256xf32>
    %16 = tpu.matmul %14, %15, %cst_12 {dimension_numbers = #tpu.dot_dimension_numbers<[1], [0], [0], [1], [0, 0, 1, 1], [], []>} : vector<8x512xbf16>, vector<512x256xbf16>, vector<8x256xf32> -> vector<8x256xf32>
    %c0_13 = arith.constant 0 : index
    %c0_14 = arith.constant 0 : index
    %17 = vector.load %arg7[%c0_13, %c0_14] : memref<1x256xf32, #tpu.memory_space<vmem>>, vector<1x256xf32>
    %18 = vector.broadcast %17 : vector<1x256xf32> to vector<8x256xf32>
    %19 = arith.addf %16, %18 : vector<8x256xf32>
    %20 = arith.truncf %19 : vector<8x256xf32> to vector<8x256xbf16>
    %21 = math.tanh %20 : vector<8x256xbf16>
    %c0_15 = arith.constant 0 : index
    %c0_16 = arith.constant 0 : index
    %22 = vector.load %arg8[%c0_15, %c0_16] : memref<256x8xbf16, #tpu.memory_space<vmem>>, vector<256x8xbf16>
    %cst_17 = arith.constant dense<0.000000e+00> : vector<8x8xf32>
    %23 = tpu.matmul %21, %22, %cst_17 {dimension_numbers = #tpu.dot_dimension_numbers<[1], [0], [0], [1], [0, 0, 1, 1], [], []>} : vector<8x256xbf16>, vector<256x8xbf16>, vector<8x8xf32> -> vector<8x8xf32>
    %c0_18 = arith.constant 0 : index
    %c0_19 = arith.constant 0 : index
    %24 = vector.load %arg9[%c0_18, %c0_19] : memref<1x8xf32, #tpu.memory_space<vmem>>, vector<1x8xf32>
    %25 = vector.broadcast %24 : vector<1x8xf32> to vector<8x8xf32>
    %26 = arith.addf %23, %25 : vector<8x8xf32>
    %c0_20 = arith.constant 0 : index
    %c0_21 = arith.constant 0 : index
    %27 = vector.load %arg10[%c0_20, %c0_21] : memref<1x8xf32, #tpu.memory_space<vmem>>, vector<1x8xf32>
    %28 = vector.broadcast %27 : vector<1x8xf32> to vector<8x8xf32>
    %29 = arith.mulf %26, %28 : vector<8x8xf32>
    %c0_22 = arith.constant 0 : index
    %c0_23 = arith.constant 0 : index
    %30 = vector.load %arg11[%c0_22, %c0_23] : memref<1x8xf32, #tpu.memory_space<vmem>>, vector<1x8xf32>
    %31 = vector.broadcast %30 : vector<1x8xf32> to vector<8x8xf32>
    %32 = arith.subf %29, %31 : vector<8x8xf32>
    %c0_24 = arith.constant 0 : index
    %c0_25 = arith.constant 0 : index
    %33 = vector.load %arg12[%c0_24, %c0_25] : memref<8x8xf32, #tpu.memory_space<vmem>>, vector<8x8xf32>
    tpu.vector_store %arg12[%c0_24, %c0_25], %26 {strides = array<i32>} : memref<8x8xf32, #tpu.memory_space<vmem>>, vector<8x8xf32>,
    %c0_26 = arith.constant 0 : index
    %c0_27 = arith.constant 0 : index
    %34 = vector.load %arg13[%c0_26, %c0_27] : memref<8x8xf32, #tpu.memory_space<vmem>>, vector<8x8xf32>
    tpu.vector_store %arg13[%c0_26, %c0_27], %32 {strides = array<i32>} : memref<8x8xf32, #tpu.memory_space<vmem>>, vector<8x8xf32>,
    return
  }
  func.func @transform_0(%arg0: i32) -> (i32, i32) {
    %c0_i32 = arith.constant 0 : i32
    %c0_i32_0 = arith.constant 0 : i32
    return %arg0, %c0_i32 : i32, i32
  }
  func.func @transform_1(%arg0: i32) -> (i32, i32) {
    %c0_i32 = arith.constant 0 : i32
    %c0_i32_0 = arith.constant 0 : i32
    %c0_i32_1 = arith.constant 0 : i32
    return %c0_i32, %c0_i32_0 : i32, i32
  }
  func.func @transform_2(%arg0: i32) -> (i32, i32) {
    %c0_i32 = arith.constant 0 : i32
    %c0_i32_0 = arith.constant 0 : i32
    %c0_i32_1 = arith.constant 0 : i32
    return %c0_i32, %c0_i32_0 : i32, i32
  }
  func.func @transform_3(%arg0: i32) -> (i32, i32) {
    %c0_i32 = arith.constant 0 : i32
    %c0_i32_0 = arith.constant 0 : i32
    %c0_i32_1 = arith.constant 0 : i32
    return %c0_i32, %c0_i32_0 : i32, i32
  }
  func.func @transform_4(%arg0: i32) -> (i32, i32) {
    %c0_i32 = arith.constant 0 : i32
    %c0_i32_0 = arith.constant 0 : i32
    %c0_i32_1 = arith.constant 0 : i32
    return %c0_i32, %c0_i32_0 : i32, i32
  }
  func.func @transform_5(%arg0: i32) -> (i32, i32) {
    %c0_i32 = arith.constant 0 : i32
    %c0_i32_0 = arith.constant 0 : i32
    %c0_i32_1 = arith.constant 0 : i32
    return %c0_i32, %c0_i32_0 : i32, i32
  }
  func.func @transform_6(%arg0: i32) -> (i32, i32) {
    %c0_i32 = arith.constant 0 : i32
    %c0_i32_0 = arith.constant 0 : i32
    %c0_i32_1 = arith.constant 0 : i32
    return %c0_i32, %c0_i32_0 : i32, i32
  }
  func.func @transform_7(%arg0: i32) -> (i32, i32) {
    %c0_i32 = arith.constant 0 : i32
    %c0_i32_0 = arith.constant 0 : i32
    %c0_i32_1 = arith.constant 0 : i32
    return %c0_i32, %c0_i32_0 : i32, i32
  }
  func.func @transform_8(%arg0: i32) -> (i32, i32) {
    %c0_i32 = arith.constant 0 : i32
    %c0_i32_0 = arith.constant 0 : i32
    %c0_i32_1 = arith.constant 0 : i32
    return %c0_i32, %c0_i32_0 : i32, i32
  }
  func.func @transform_9(%arg0: i32) -> (i32, i32) {
    %c0_i32 = arith.constant 0 : i32
    %c0_i32_0 = arith.constant 0 : i32
    %c0_i32_1 = arith.constant 0 : i32
    return %c0_i32, %c0_i32_0 : i32, i32
  }
  func.func @transform_10(%arg0: i32) -> (i32, i32) {
    %c0_i32 = arith.constant 0 : i32
    %c0_i32_0 = arith.constant 0 : i32
    %c0_i32_1 = arith.constant 0 : i32
    return %c0_i32, %c0_i32_0 : i32, i32
  }
  func.func @transform_11(%arg0: i32) -> (i32, i32) {
    %c0_i32 = arith.constant 0 : i32
    %c0_i32_0 = arith.constant 0 : i32
    return %arg0, %c0_i32 : i32, i32
  }
  func.func @transform_12(%arg0: i32) -> (i32, i32) {
    %c0_i32 = arith.constant 0 : i32
    %c0_i32_0 = arith.constant 0 : i32
    return %arg0, %c0_i32 : i32, i32
  }
}

</mosaic_0001>

<bundles_post_ra>
// kernel: compute_rle_feat.1
= control target key start
LH: loop header
LB: loop body
LE: loop exit
PB: predicated region body
PF: predicated region fallthrough
CT: control target
= control target key end

     0   :  { %vm101_vm0 = vcmask 261120   ;;  %s4402_s0 = inlined_call_operand.vmem [shape: bf16[8,32], index: 0, kind: input, shape index: {}]   ;;  %s4403_s1 = inlined_call_operand.vmem [shape: bf16[32,512], index: 1, kind: input, shape index: {}]   ;;  %s4404_s2 = inlined_call_operand.vmem [shape: f32[1,512], index: 2, kind: input, shape index: {}]   ;;  %s4405_s3 = inlined_call_operand.vmem [shape: bf16[512,512], index: 3, kind: input, shape index: {}]   ;;  %s4406_s4 = inlined_call_operand.vmem [shape: f32[1,512], index: 4, kind: input, shape index: {}]   ;;  %s4407_s5 = inlined_call_operand.vmem [shape: bf16[512,256], index: 5, kind: input, shape index: {}]   ;;  %s4408_s6 = inlined_call_operand.vmem [shape: f32[1,256], index: 6, kind: input, shape index: {}]   ;;  %s4409_s7 = inlined_call_operand.vmem [shape: bf16[256,8], index: 7, kind: input, shape index: {}]   ;;  %s4410_s8 = inlined_call_operand.vmem [shape: f32[1,8], index: 8, kind: input, shape index: {}]   ;;  %s4411_s9 = inlined_call_operand.vmem [shape: f32[1,8], index: 9, kind: input, shape index: {}]   ;;  %s4412_s10 = inlined_call_operand.vmem [shape: f32[1,8], index: 10, kind: input, shape index: {}]   ;;  %s4413_s11 = inlined_call_operand.hbm [shape: f32[8,8], index: 11, kind: output, shape index: {0}]   ;;  %s4414_s12 = inlined_call_operand.vmem [shape: f32[8,8], index: 12, kind: output, shape index: {1}]  }
   0x1   :  { %v1886_v0 = vld [vmem:[%s4403_s1 + $0x20] sm:$0xf]  ;;  %v2742_v1 = vld [vmem:[%s4403_s1 + $0x2c] sm:$0xf0]  ;;  %v2740_v2 = vld [vmem:[%s4403_s1 + $0x24] sm:$0xf] }
   0x2   :  { %v1887_v3 = vor.u32 %v2742_v1, %v1886_v0  ;;  %v1888_v4 = vld [vmem:[%s4403_s1 + $0x30] sm:$0xf0]  ;;  %v1870_v5 = vld [vmem:[%s4403_s1] sm:$0xf]  ;;  %v2738_v6 = vld [vmem:[%s4403_s1 + $0xc] sm:$0xf0] }
   0x3   :  { %v1891_v7 = vor.u32 %v2740_v2, %v1888_v4  ;;  %v2736_v8 = vld [vmem:[%s4403_s1 + $0x4] sm:$0xf]  ;;  %v1872_v9 = vld [vmem:[%s4403_s1 + $0x10] sm:$0xf0]  ;;  %v1871_v10 = vor.u32 %v2738_v6, %v1870_v5  ;;  %v1894_v11 = vld [vmem:[%s4403_s1 + $0x28] sm:$0xf] }
   0x4   :  { %111 = vmatpush.bf16.msra.mxu2 %v1887_v3  ;;  %v2743_v12 = vld [vmem:[%s4403_s1 + $0x34] sm:$0xf0]  ;;  %v1875_v13 = vor.u32 %v2736_v8, %v1872_v9  ;;  %v2741_v15 = vld [vmem:[%s4403_s1 + $0x2c] sm:$0xf]  ;;  %v1896_v16 = vld [vmem:[%s4403_s1 + $0x38] sm:$0xf0] }
   0x5   :  { %124 = vmatpush.bf16.msra.mxu3 %v1891_v7  ;;  %v1895_v14 = vor.u32 %v2743_v12, %v1894_v11  ;;  %v1878_v17 = vld [vmem:[%s4403_s1 + $0x8] sm:$0xf]  ;;  %v3110_v18 = vld [vmem:[%s4402_s0] sm:$0xf]  ;;  %v1899_v19 = vor.u32 %v2741_v15, %v1896_v16  ;;  %v2739_v20 = vld [vmem:[%s4403_s1 + $0x14] sm:$0xf0] }
   0x6   :  { %v2737_v21 = vld [vmem:[%s4403_s1 + $0xc] sm:$0xf]  ;;  %v1880_v22 = vld [vmem:[%s4403_s1 + $0x18] sm:$0xf0]  ;;  %v2018_v23 = vld [vmem:[%s4405_s3 + $0xe0] sm:$0xf]  ;;  %v1879_v30 = vor.u32 %v2739_v20, %v1878_v17 }
   0x7   :  { %v2774_v24 = vld [vmem:[%s4405_s3 + $0xec] sm:$0xf0]  ;;  %v2146_v25 = vld [vmem:[%s4405_s3 + $0x1e0] sm:$0xf]  ;;  %v1883_v34 = vor.u32 %v2737_v21, %v1880_v22 }
   0x8   :  { %112 = vmatpush.bf16.msra.mxu2 %v1871_v10  ;;  %v2019_v26 = vor.u32 %v2774_v24, %v2018_v23  ;;  %v2806_v27 = vld [vmem:[%s4405_s3 + $0x1ec] sm:$0xf0]  ;;  %v2002_v28 = vld [vmem:[%s4405_s3 + $0xc0] sm:$0xf] }
   0x9   :  { %v2770_v29 = vld [vmem:[%s4405_s3 + $0xcc] sm:$0xf0]  ;;  %125 = vmatpush.bf16.msra.mxu3 %v1875_v13  ;;  %v2147_v31 = vor.u32 %v2806_v27, %v2146_v25  ;;  %v2130_v32 = vld [vmem:[%s4405_s3 + $0x1c0] sm:$0xf] }
   0xa   :  { %v2802_v33 = vld [vmem:[%s4405_s3 + $0x1cc] sm:$0xf0]  ;;  %951 = vmatpush.bf16.msra.mxu0 %v2019_v26  ;;  %v2003_v35 = vor.u32 %v2770_v29, %v2002_v28  ;;  %v1986_v37 = vld [vmem:[%s4405_s3 + $0xa0] sm:$0xf] }
   0xb   :  { %1900 = vmatmul.msk.bf16.vlgmr.msra.gmra.mxu2 %vm101_vm0, %v3110_v18  ;;  %964 = vmatpush.bf16.msra.mxu1 %v2147_v31  ;;  %v2131_v36 = vor.u32 %v2802_v33, %v2130_v32  ;;  %v2766_v38 = vld [vmem:[%s4405_s3 + $0xac] sm:$0xf0]  ;;  %v2114_v39 = vld [vmem:[%s4405_s3 + $0x1a0] sm:$0xf] }
   0xc   :  { %137 = vmatpush.bf16.msrb.mxu2 %v1895_v14  ;;  %1901 = vmatmul.msk.bf16.vlgmr.msra.gmra.mxu3 %vm101_vm0, %v3110_v18  ;;  %v2798_v40 = vld [vmem:[%s4405_s3 + $0x1ac] sm:$0xf0]  ;;  %v2274_v41 = vld [vmem:[%s4405_s3 + $0x2e0] sm:$0xf]  ;;  %v1987_v42 = vor.u32 %v2766_v38, %v1986_v37 }
   0xd   :  { %150 = vmatpush.bf16.msrb.mxu3 %v1899_v19  ;;  %v2838_v43 = vld [vmem:[%s4405_s3 + $0x2ec] sm:$0xf0]  ;;  %v2402_v44 = vld [vmem:[%s4405_s3 + $0x3e0] sm:$0xf]  ;;  %v2115_v46 = vor.u32 %v2798_v40, %v2114_v39 }
   0xe   :  { %952 = vmatpush.bf16.msra.mxu0 %v2003_v35  ;;  %v2870_v45 = vld [vmem:[%s4405_s3 + $0x3ec] sm:$0xf0]  ;;  %v1970_v47 = vld [vmem:[%s4405_s3 + $0x80] sm:$0xf]  ;;  %v2275_v50 = vor.u32 %v2838_v43, %v2274_v41  ;;  %v2772_v41 = vld [vmem:[%s4405_s3 + $0xe4] sm:$0xf] }
   0xf   :  { %965 = vmatpush.bf16.msra.mxu1 %v2131_v36  ;;  %v2762_v48 = vld [vmem:[%s4405_s3 + $0x8c] sm:$0xf0]  ;;  %v2098_v49 = vld [vmem:[%s4405_s3 + $0x180] sm:$0xf]  ;;  %v2403_v51 = vor.u32 %v2870_v45, %v2402_v44  ;;  %v2804_v43 = vld [vmem:[%s4405_s3 + $0x1e4] sm:$0xf] }
  0x10   :  { %138 = vmatpush.bf16.msrb.mxu2 %v1879_v30  ;;  %v2794_v52 = vld [vmem:[%s4405_s3 + $0x18c] sm:$0xf0]  ;;  %v2258_v53 = vld [vmem:[%s4405_s3 + $0x2c0] sm:$0xf]  ;;  %v1971_v58 = vor.u32 %v2762_v48, %v1970_v47  ;;  %v2148_v44 = vld [vmem:[%s4405_s3 + $0x1f0] sm:$0xf0] }
  0x11   :  { %151 = vmatpush.bf16.msrb.mxu3 %v1883_v34  ;;  %v2834_v54 = vld [vmem:[%s4405_s3 + $0x2cc] sm:$0xf0]  ;;  %v2386_v56 = vld [vmem:[%s4405_s3 + $0x3c0] sm:$0xf]  ;;  %v2099_v62 = vor.u32 %v2794_v52, %v2098_v49 }
  0x12   :  { %v2259_v55 = vor.u32 %v2834_v54, %v2258_v53  ;;  %v2866_v57 = vld [vmem:[%s4405_s3 + $0x3cc] sm:$0xf0]  ;;  %953 = vmatpush.bf16.msra.mxu0 %v1987_v42  ;;  %v1954_v59 = vld [vmem:[%s4405_s3 + $0x60] sm:$0xf]  ;;  %v2020_v42 = vld [vmem:[%s4405_s3 + $0xf0] sm:$0xf0] }
  0x13   :  { %v2758_v60 = vld [vmem:[%s4405_s3 + $0x6c] sm:$0xf0]  ;;  %v2387_v61 = vor.u32 %v2866_v57, %v2386_v56  ;;  %966 = vmatpush.bf16.msra.mxu1 %v2115_v46  ;;  %v2242_v63 = vld [vmem:[%s4405_s3 + $0x2a0] sm:$0xf] }
  0x14   :  { %977 = vmatpush.bf16.msra.mxu2 %v2275_v50  ;;  %v2830_v0 = vld [vmem:[%s4405_s3 + $0x2ac] sm:$0xf0]  ;;  %v2370_v1 = vld [vmem:[%s4405_s3 + $0x3a0] sm:$0xf]  ;;  %v1955_v8 = vor.u32 %v2758_v60, %v1954_v59 }
  0x15   :  { %990 = vmatpush.bf16.msra.mxu3 %v2403_v51  ;;  %v2082_v2 = vld [vmem:[%s4405_s3 + $0x160] sm:$0xf]  ;;  %v2790_v3 = vld [vmem:[%s4405_s3 + $0x16c] sm:$0xf0]  ;;  %v2243_v5 = vor.u32 %v2830_v0, %v2242_v63 }
  0x16   :  { %v2862_v4 = vld [vmem:[%s4405_s3 + $0x3ac] sm:$0xf0]  ;;  %v2226_v7 = vld [vmem:[%s4405_s3 + $0x280] sm:$0xf]  ;;  %954 = vmatpush.bf16.msra.mxu0 %v1971_v58  ;;  %v2083_v12 = vor.u32 %v2790_v3, %v2082_v2 }
  0x17   :  { %v2371_v6 = vor.u32 %v2862_v4, %v2370_v1  ;;  %v2826_v9 = vld [vmem:[%s4405_s3 + $0x28c] sm:$0xf0]  ;;  %v2354_v10 = vld [vmem:[%s4405_s3 + $0x380] sm:$0xf]  ;;  %967 = vmatpush.bf16.msra.mxu1 %v2099_v62 }
  0x18   :  { %978 = vmatpush.bf16.msra.mxu2 %v2259_v55  ;;  %v2858_v11 = vld [vmem:[%s4405_s3 + $0x38c] sm:$0xf0]  ;;  %v1938_v13 = vld [vmem:[%s4405_s3 + $0x40] sm:$0xf]  ;;  %v2227_v17 = vor.u32 %v2826_v9, %v2226_v7 }
  0x19   :  { %991 = vmatpush.bf16.msra.mxu3 %v2387_v61  ;;  %v2754_v14 = vld [vmem:[%s4405_s3 + $0x4c] sm:$0xf0]  ;;  %v2066_v15 = vld [vmem:[%s4405_s3 + $0x140] sm:$0xf]  ;;  %v2355_v19 = vor.u32 %v2858_v11, %v2354_v10 }
  0x1a   :  { %v2786_v16 = vld [vmem:[%s4405_s3 + $0x14c] sm:$0xf0]  ;;  %v2210_v20 = vld [vmem:[%s4405_s3 + $0x260] sm:$0xf]  ;;  %955 = vmatpush.bf16.msra.mxu0 %v1955_v8  ;;  %v1939_v21 = vor.u32 %v2754_v14, %v1938_v13 }
  0x1b   :  { %v2822_v22 = vld [vmem:[%s4405_s3 + $0x26c] sm:$0xf0]  ;;  %v2338_v23 = vld [vmem:[%s4405_s3 + $0x360] sm:$0xf]  ;;  %1902 = vmatmul.msk.bf16.vlgmr.msrb.gmra.mxu2 %vm101_vm0, %v3110_v18  ;;  %968 = vmatpush.bf16.msra.mxu1 %v2083_v12  ;;  %v2067_v25 = vor.u32 %v2786_v16, %v2066_v15 }
  0x1c   :  { %979 = vmatpush.bf16.msra.mxu2 %v2243_v5  ;;  %v2854_v24 = vld [vmem:[%s4405_s3 + $0x36c] sm:$0xf0]  ;;  %v1922_v26 = vld [vmem:[%s4405_s3 + $0x20] sm:$0xf]  ;;  %1903 = vmatmul.msk.bf16.vlgmr.msrb.gmra.mxu3 %vm101_vm0, %v3110_v18  ;;  %v2211_v32 = vor.u32 %v2822_v22, %v2210_v20 }
  0x1d   :  { %992 = vmatpush.bf16.msra.mxu3 %v2371_v6  ;;  %v2750_v27 = vld [vmem:[%s4405_s3 + $0x2c] sm:$0xf0]  ;;  %v2050_v28 = vld [vmem:[%s4405_s3 + $0x120] sm:$0xf]  ;;  %v2339_v18 = vor.u32 %v2854_v24, %v2338_v23 }
  0x1e   :  { %v2782_v29 = vld [vmem:[%s4405_s3 + $0x12c] sm:$0xf0]  ;;  %v1906_v30 = vld [vmem:[%s4405_s3] sm:$0xf]  ;;  %956 = vmatpush.bf16.msra.mxu0 %v1939_v21  ;;  %v1923_v34 = vor.u32 %v2750_v27, %v1922_v26 }
  0x1f   :  { %v2746_v31 = vld [vmem:[%s4405_s3 + $0xc] sm:$0xf0]  ;;  %v2194_v33 = vld [vmem:[%s4405_s3 + $0x240] sm:$0xf]  ;;  %969 = vmatpush.bf16.msra.mxu1 %v2067_v25  ;;  %v2051_v40 = vor.u32 %v2782_v29, %v2050_v28 }
  0x20   :  { %980 = vmatpush.bf16.msra.mxu2 %v2227_v17  ;;  %v2034_v35 = vld [vmem:[%s4405_s3 + $0x100] sm:$0xf]  ;;  %v2778_v36 = vld [vmem:[%s4405_s3 + $0x10c] sm:$0xf0]  ;;  %v1907_v49 = vor.u32 %v2746_v31, %v1906_v30 }
  0x21   :  { %993 = vmatpush.bf16.msra.mxu3 %v2355_v19  ;;  %v2818_v37 = vld [vmem:[%s4405_s3 + $0x24c] sm:$0xf0]  ;;  %v2322_v38 = vld [vmem:[%s4405_s3 + $0x340] sm:$0xf] }
  0x22   :  { %v2850_v39 = vld [vmem:[%s4405_s3 + $0x34c] sm:$0xf0]  ;;  %v2178_v45 = vld [vmem:[%s4405_s3 + $0x220] sm:$0xf]  ;;  %v2195_v46 = vor.u32 %v2818_v37, %v2194_v33  ;;  %957 = vmatpush.bf16.msra.mxu0 %v1923_v34 }
  0x23   :  { %v2323_v47 = vor.u32 %v2850_v39, %v2322_v38  ;;  %v2814_v48 = vld [vmem:[%s4405_s3 + $0x22c] sm:$0xf0]  ;;  %v2306_v50 = vld [vmem:[%s4405_s3 + $0x320] sm:$0xf] }
  0x24   :  { %981 = vmatpush.bf16.msra.mxu2 %v2211_v32  ;;  %v2846_v51 = vld [vmem:[%s4405_s3 + $0x32c] sm:$0xf0] }
  0x25   :  { %994 = vmatpush.bf16.msra.mxu3 %v2339_v18 }
  0x26   :  { %18 = vsyncpa [#allocation3], 0  ;;  %970 = vmatpush.bf16.msra.mxu1 %v2051_v40  ;;  %v2035_v52 = vor.u32 %v2778_v36, %v2034_v35  ;;  %v2023_v53 = vor.u32 %v2772_v41, %v2020_v42  ;;  %v2151_v54 = vor.u32 %v2804_v43, %v2148_v44  ;;  %v2768_v55 = vld [vmem:[%s4405_s3 + $0xc4] sm:$0xf]  ;;  %v2004_v56 = vld [vmem:[%s4405_s3 + $0xd0] sm:$0xf0]  ;;  %v2179_v59 = vor.u32 %v2814_v48, %v2178_v45 }
  0x27   :  { %v2800_v57 = vld [vmem:[%s4405_s3 + $0x1c4] sm:$0xf]  ;;  %v2132_v58 = vld [vmem:[%s4405_s3 + $0x1d0] sm:$0xf0]  ;;  %v2307_v60 = vor.u32 %v2846_v51, %v2306_v50  ;;  %958 = vmatpush.bf16.msra.mxu0 %v1907_v49  ;;  %v2007_v61 = vor.u32 %v2768_v55, %v2004_v56  ;;  %v2162_v11 = vld [vmem:[%s4405_s3 + $0x200] sm:$0xf] }
  0x28   :  { %982 = vmatpush.bf16.msra.mxu2 %v2195_v46  ;;  %v2135_v62 = vor.u32 %v2800_v57, %v2132_v58  ;;  %v2764_v63 = vld [vmem:[%s4405_s3 + $0xa4] sm:$0xf]  ;;  %v1988_v0 = vld [vmem:[%s4405_s3 + $0xb0] sm:$0xf0]  ;;  %v2810_v12 = vld [vmem:[%s4405_s3 + $0x20c] sm:$0xf0] }
  0x29   :  { %995 = vmatpush.bf16.msra.mxu3 %v2323_v47  ;;  %v2796_v1 = vld [vmem:[%s4405_s3 + $0x1a4] sm:$0xf]  ;;  %v2116_v2 = vld [vmem:[%s4405_s3 + $0x1b0] sm:$0xf0]  ;;  %v1991_v3 = vor.u32 %v2764_v63, %v1988_v0  ;;  %v2163_v13 = vor.u32 %v2810_v12, %v2162_v11  ;;  %v2290_v14 = vld [vmem:[%s4405_s3 + $0x300] sm:$0xf] }
  0x2a   :  { %971 = vmatpush.bf16.msra.mxu1 %v2035_v52  ;;  %v2119_v4 = vor.u32 %v2796_v1, %v2116_v2  ;;  %v2760_v5 = vld [vmem:[%s4405_s3 + $0x84] sm:$0xf]  ;;  %v1972_v6 = vld [vmem:[%s4405_s3 + $0x90] sm:$0xf0]  ;;  %v2842_v15 = vld [vmem:[%s4405_s3 + $0x30c] sm:$0xf0] }
  0x2b   :  { %1003 = vmatpush.bf16.msrb.mxu0 %v2023_v53  ;;  %v2792_v7 = vld [vmem:[%s4405_s3 + $0x184] sm:$0xf]  ;;  %v2100_v8 = vld [vmem:[%s4405_s3 + $0x190] sm:$0xf0]  ;;  %v1975_v9 = vor.u32 %v2760_v5, %v1972_v6  ;;  %v2291_v17 = vor.u32 %v2842_v15, %v2290_v14  ;;  %s3002_s15 = smov [#allocation2]   ;;  %s1855_s19 = sshll.u32 %s4413_s11, 4  ;;  %s1856_s19 = int_to_ptr.hbm [resolvable:$true] %s1855_s19 }
  0x2c   :  { %983 = vmatpush.bf16.msra.mxu2 %v2179_v59  ;;  %v2103_v10 = vor.u32 %v2792_v7, %v2100_v8  ;;  %v2756_v16 = vld [vmem:[%s4405_s3 + $0x64] sm:$0xf]  ;;  %v1956_v19 = vld [vmem:[%s4405_s3 + $0x70] sm:$0xf0]  ;;  %s1853_s16 = sshll.u32 %s3002_s15, 4  ;;  %vm1845_vm1 = vcmask 64512   ;;  %s1854_s16 = int_to_ptr.vmem [resolvable:$true] %s1853_s16 }
  0x2d   :  { %996 = vmatpush.bf16.msra.mxu3 %v2307_v60  ;;  %v2788_v20 = vld [vmem:[%s4405_s3 + $0x164] sm:$0xf]  ;;  %v2084_v21 = vld [vmem:[%s4405_s3 + $0x170] sm:$0xf0]  ;;  %v1959_v22 = vor.u32 %v2756_v16, %v1956_v19 }
  0x2e   :  { %1016 = vmatpush.bf16.msrb.mxu1 %v2151_v54  ;;  %v2087_v23 = vor.u32 %v2788_v20, %v2084_v21  ;;  %v2836_v24 = vld [vmem:[%s4405_s3 + $0x2e4] sm:$0xf]  ;;  %v2276_v25 = vld [vmem:[%s4405_s3 + $0x2f0] sm:$0xf0] }
  0x2f   :  { %1004 = vmatpush.bf16.msrb.mxu0 %v2007_v61  ;;  %v2868_v26 = vld [vmem:[%s4405_s3 + $0x3e4] sm:$0xf]  ;;  %v2279_v27 = vor.u32 %v2836_v24, %v2276_v25  ;;  %v2404_v28 = vld [vmem:[%s4405_s3 + $0x3f0] sm:$0xf0] }
  0x30   :  { %984 = vmatpush.bf16.msra.mxu2 %v2163_v13  ;;  %v2407_v29 = vor.u32 %v2868_v26, %v2404_v28  ;;  %v2752_v30 = vld [vmem:[%s4405_s3 + $0x44] sm:$0xf]  ;;  %v1940_v31 = vld [vmem:[%s4405_s3 + $0x50] sm:$0xf0]  ;;  %v51_v13 = vld [vmem:[%s4404_s2] sm:$0xf] }
  0x31   :  { %997 = vmatpush.bf16.msra.mxu3 %v2291_v17  ;;  %v2784_v32 = vld [vmem:[%s4405_s3 + $0x144] sm:$0xf]  ;;  %v1943_v18 = vor.u32 %v2752_v30, %v1940_v31  ;;  %v2068_v33 = vld [vmem:[%s4405_s3 + $0x150] sm:$0xf0]  ;;  %v53_v21 = vperm.slane %v51_v13, 0 }
  0x32   :  { %1017 = vmatpush.bf16.msrb.mxu1 %v2135_v62  ;;  %v2832_v34 = vld [vmem:[%s4405_s3 + $0x2c4] sm:$0xf]  ;;  %v2260_v35 = vld [vmem:[%s4405_s3 + $0x2d0] sm:$0xf0]  ;;  %v2071_v36 = vor.u32 %v2784_v32, %v2068_v33 }
  0x33   :  { %1005 = vmatpush.bf16.msrb.mxu0 %v1991_v3  ;;  %v2263_v37 = vor.u32 %v2832_v34, %v2260_v35  ;;  %v2864_v38 = vld [vmem:[%s4405_s3 + $0x3c4] sm:$0xf]  ;;  %v2388_v39 = vld [vmem:[%s4405_s3 + $0x3d0] sm:$0xf0] }
  0x34   :  { %1029 = vmatpush.bf16.msrb.mxu2 %v2279_v27  ;;  %v2391_v40 = vor.u32 %v2864_v38, %v2388_v39  ;;  %v2748_v41 = vld [vmem:[%s4405_s3 + $0x24] sm:$0xf]  ;;  %v1924_v42 = vld [vmem:[%s4405_s3 + $0x30] sm:$0xf0]  ;;  %v2026_v38 = vld [vmem:[%s4405_s3 + $0xe8] sm:$0xf] }
  0x35   :  { %1042 = vmatpush.bf16.msrb.mxu3 %v2407_v29  ;;  %v2780_v43 = vld [vmem:[%s4405_s3 + $0x124] sm:$0xf]  ;;  %v1927_v44 = vor.u32 %v2748_v41, %v1924_v42  ;;  %v2052_v45 = vld [vmem:[%s4405_s3 + $0x130] sm:$0xf0]  ;;  %v2775_v39 = vld [vmem:[%s4405_s3 + $0xf4] sm:$0xf0] }
  0x36   :  { %1018 = vmatpush.bf16.msrb.mxu1 %v2119_v4  ;;  %v2828_v46 = vld [vmem:[%s4405_s3 + $0x2a4] sm:$0xf]  ;;  %v2244_v47 = vld [vmem:[%s4405_s3 + $0x2b0] sm:$0xf0]  ;;  %v2055_v48 = vor.u32 %v2780_v43, %v2052_v45  ;;  %v2807_v41 = vld [vmem:[%s4405_s3 + $0x1f4] sm:$0xf0] }
  0x37   :  { %1006 = vmatpush.bf16.msrb.mxu0 %v1975_v9  ;;  %v2247_v49 = vor.u32 %v2828_v46, %v2244_v47  ;;  %v2860_v50 = vld [vmem:[%s4405_s3 + $0x3a4] sm:$0xf]  ;;  %v2372_v51 = vld [vmem:[%s4405_s3 + $0x3b0] sm:$0xf0]  ;;  %v55_v43 = vperm.slane %v51_v13, 2  ;;  %v56_v47 = vperm.slane %v51_v13, 3 }
  0x38   :  { %1030 = vmatpush.bf16.msrb.mxu2 %v2263_v37  ;;  %v2375_v52 = vor.u32 %v2860_v50, %v2372_v51  ;;  %v2744_v53 = vld [vmem:[%s4405_s3 + $0x4] sm:$0xf]  ;;  %v1908_v54 = vld [vmem:[%s4405_s3 + $0x10] sm:$0xf0]  ;;  %v2771_v50 = vld [vmem:[%s4405_s3 + $0xd4] sm:$0xf0] }
  0x39   :  { %1043 = vmatpush.bf16.msrb.mxu3 %v2391_v40  ;;  %v2776_v55 = vld [vmem:[%s4405_s3 + $0x104] sm:$0xf]  ;;  %v1911_v56 = vor.u32 %v2744_v53, %v1908_v54  ;;  %v2036_v57 = vld [vmem:[%s4405_s3 + $0x110] sm:$0xf0]  ;;  %v2154_v40 = vld [vmem:[%s4405_s3 + $0x1e8] sm:$0xf] }
  0x3a   :  { %1019 = vmatpush.bf16.msrb.mxu1 %v2103_v10  ;;  %v2824_v58 = vld [vmem:[%s4405_s3 + $0x284] sm:$0xf]  ;;  %v2228_v59 = vld [vmem:[%s4405_s3 + $0x290] sm:$0xf0]  ;;  %v2039_v60 = vor.u32 %v2776_v55, %v2036_v57  ;;  %v2803_v53 = vld [vmem:[%s4405_s3 + $0x1d4] sm:$0xf0] }
  0x3b   :  { %1007 = vmatpush.bf16.msrb.mxu0 %v1959_v22  ;;  %v2231_v61 = vor.u32 %v2824_v58, %v2228_v59  ;;  %v2856_v62 = vld [vmem:[%s4405_s3 + $0x384] sm:$0xf]  ;;  %v2356_v63 = vld [vmem:[%s4405_s3 + $0x390] sm:$0xf0]  ;;  %v54_v22 = vperm.slane %v51_v13, 1 }
  0x3c   :  { %1031 = vmatpush.bf16.msrb.mxu2 %v2247_v49  ;;  %v2359_v0 = vor.u32 %v2856_v62, %v2356_v63  ;;  %v2820_v1 = vld [vmem:[%s4405_s3 + $0x264] sm:$0xf]  ;;  %v2212_v2 = vld [vmem:[%s4405_s3 + $0x270] sm:$0xf0]  ;;  %v2010_v49 = vld [vmem:[%s4405_s3 + $0xc8] sm:$0xf] }
  0x3d   :  { %1044 = vmatpush.bf16.msrb.mxu3 %v2375_v52  ;;  %v2852_v3 = vld [vmem:[%s4405_s3 + $0x364] sm:$0xf]  ;;  %v2215_v4 = vor.u32 %v2820_v1, %v2212_v2  ;;  %v2340_v5 = vld [vmem:[%s4405_s3 + $0x370] sm:$0xf0]  ;;  %v2138_v52 = vld [vmem:[%s4405_s3 + $0x1c8] sm:$0xf]  ;;  %v2011_v57 = vor.u32 %v2771_v50, %v2010_v49 }
  0x3e   :  { %1020 = vmatpush.bf16.msrb.mxu1 %v2087_v23  ;;  %v2343_v6 = vor.u32 %v2852_v3, %v2340_v5  ;;  %v2816_v7 = vld [vmem:[%s4405_s3 + $0x244] sm:$0xf]  ;;  %v2196_v8 = vld [vmem:[%s4405_s3 + $0x250] sm:$0xf0]  ;;  %v2139_v59 = vor.u32 %v2803_v53, %v2138_v52  ;;  %v2122_v63 = vld [vmem:[%s4405_s3 + $0x1a8] sm:$0xf] }
  0x3f   :  { %1008 = vmatpush.bf16.msrb.mxu0 %v1943_v18  ;;  %v2848_v9 = vld [vmem:[%s4405_s3 + $0x344] sm:$0xf]  ;;  %v2199_v10 = vor.u32 %v2816_v7, %v2196_v8  ;;  %v2324_v11 = vld [vmem:[%s4405_s3 + $0x350] sm:$0xf0]  ;;  %v2763_v7 = vld [vmem:[%s4405_s3 + $0x94] sm:$0xf0] }
  0x40   :  { %1032 = vmatpush.bf16.msrb.mxu2 %v2231_v61  ;;  %v2327_v12 = vor.u32 %v2848_v9, %v2324_v11  ;;  %v2812_v14 = vld [vmem:[%s4405_s3 + $0x224] sm:$0xf]  ;;  %v2180_v15 = vld [vmem:[%s4405_s3 + $0x230] sm:$0xf0]  ;;  %v2767_v61 = vld [vmem:[%s4405_s3 + $0xb4] sm:$0xf0] }
  0x41   :  { %1045 = vmatpush.bf16.msrb.mxu3 %v2359_v0  ;;  %v2844_v16 = vld [vmem:[%s4405_s3 + $0x324] sm:$0xf]  ;;  %v2183_v17 = vor.u32 %v2812_v14, %v2180_v15  ;;  %v2308_v19 = vld [vmem:[%s4405_s3 + $0x330] sm:$0xf0]  ;;  %v2799_v0 = vld [vmem:[%s4405_s3 + $0x1b4] sm:$0xf0] }
  0x42   :  { %1021 = vmatpush.bf16.msrb.mxu1 %v2071_v36  ;;  %v2311_v20 = vor.u32 %v2844_v16, %v2308_v19  ;;  %v2808_v23 = vld [vmem:[%s4405_s3 + $0x204] sm:$0xf]  ;;  %v2164_v24 = vld [vmem:[%s4405_s3 + $0x210] sm:$0xf0]  ;;  %v2123_v5 = vor.u32 %v2799_v0, %v2122_v63  ;;  %v2106_v8 = vld [vmem:[%s4405_s3 + $0x188] sm:$0xf] }
  0x43   :  { %1009 = vmatpush.bf16.msrb.mxu0 %v1927_v44  ;;  %v2840_v25 = vld [vmem:[%s4405_s3 + $0x304] sm:$0xf]  ;;  %v2167_v26 = vor.u32 %v2808_v23, %v2164_v24  ;;  %v2292_v27 = vld [vmem:[%s4405_s3 + $0x310] sm:$0xf0]  ;;  %v2027_v44 = vor.u32 %v2775_v39, %v2026_v38  ;;  %v2795_v9 = vld [vmem:[%s4405_s3 + $0x194] sm:$0xf0] }
  0x44   :  { %1033 = vmatpush.bf16.msrb.mxu2 %v2215_v4  ;;  %v2295_v29 = vor.u32 %v2840_v25, %v2292_v27  ;;  %v2107_v13 = vor.u32 %v2795_v9, %v2106_v8  ;;  %v1962_v14 = vld [vmem:[%s4405_s3 + $0x68] sm:$0xf]  ;;  %v2759_v15 = vld [vmem:[%s4405_s3 + $0x74] sm:$0xf0]  ;;  %v2773_v0 = vld [vmem:[%s4405_s3 + $0xec] sm:$0xf] }
  0x45   :  { %1046 = vmatpush.bf16.msrb.mxu3 %v2343_v6  ;;  %v1978_v6 = vld [vmem:[%s4405_s3 + $0x88] sm:$0xf]  ;;  %v2863_v50 = vld [vmem:[%s4405_s3 + $0x3b4] sm:$0xf0] }
  0x46   :  { %1022 = vmatpush.bf16.msrb.mxu1 %v2055_v48  ;;  %v2155_v48 = vor.u32 %v2807_v41, %v2154_v40  ;;  %v2090_v16 = vld [vmem:[%s4405_s3 + $0x168] sm:$0xf]  ;;  %v2751_v41 = vld [vmem:[%s4405_s3 + $0x34] sm:$0xf0] }
  0x47   :  { %1010 = vmatpush.bf16.msrb.mxu0 %v1911_v56  ;;  %v2282_v19 = vld [vmem:[%s4405_s3 + $0x2e8] sm:$0xf]  ;;  %v2859_v63 = vld [vmem:[%s4405_s3 + $0x394] sm:$0xf0] }
  0x48   :  { %1034 = vmatpush.bf16.msrb.mxu2 %v2199_v10  ;;  %v1930_v40 = vld [vmem:[%s4405_s3 + $0x28] sm:$0xf]  ;;  %v2823_v9 = vld [vmem:[%s4405_s3 + $0x274] sm:$0xf0] }
  0x49   :  { %1047 = vmatpush.bf16.msrb.mxu3 %v2327_v12  ;;  %v1979_v12 = vor.u32 %v2763_v7, %v1978_v6  ;;  %v2378_v49 = vld [vmem:[%s4405_s3 + $0x3a8] sm:$0xf]  ;;  %v1931_v52 = vor.u32 %v2751_v41, %v1930_v40  ;;  %v2761_v40 = vld [vmem:[%s4405_s3 + $0x8c] sm:$0xf]  ;;  %v1980_v41 = vld [vmem:[%s4405_s3 + $0x98] sm:$0xf0] }
  0x4a   :  { %1023 = vmatpush.bf16.msrb.mxu1 %v2039_v60  ;;  %v1994_v60 = vld [vmem:[%s4405_s3 + $0xa8] sm:$0xf] }
  0x4b   :  { %v1995_v3 = vor.u32 %v2767_v61, %v1994_v60  ;;  %v2234_v60 = vld [vmem:[%s4405_s3 + $0x288] sm:$0xf]  ;;  %v2827_v61 = vld [vmem:[%s4405_s3 + $0x294] sm:$0xf0] }
  0x4c   :  { %1035 = vmatpush.bf16.msrb.mxu2 %v2183_v17  ;;  %v2791_v17 = vld [vmem:[%s4405_s3 + $0x174] sm:$0xf0]  ;;  %v2235_v6 = vor.u32 %v2827_v61, %v2234_v60  ;;  %v2218_v8 = vld [vmem:[%s4405_s3 + $0x268] sm:$0xf]  ;;  %v2869_v60 = vld [vmem:[%s4405_s3 + $0x3ec] sm:$0xf] }
  0x4d   :  { %1048 = vmatpush.bf16.msrb.mxu3 %v2311_v20  ;;  %v2839_v20 = vld [vmem:[%s4405_s3 + $0x2f4] sm:$0xf0]  ;;  %v2091_v27 = vor.u32 %v2791_v17, %v2090_v16  ;;  %v2801_v16 = vld [vmem:[%s4405_s3 + $0x1cc] sm:$0xf]  ;;  %v2140_v17 = vld [vmem:[%s4405_s3 + $0x1d8] sm:$0xf0] }
  0x4e   :  { %v2412_v61 = vld [vmem:[%s4405_s3 + $0x3f8] sm:$0xf0] }
  0x50   :  { %1036 = vmatpush.bf16.msrb.mxu2 %v2167_v26  ;;  %v1963_v26 = vor.u32 %v2759_v15, %v1962_v14  ;;  %v2769_v14 = vld [vmem:[%s4405_s3 + $0xcc] sm:$0xf]  ;;  %v2012_v15 = vld [vmem:[%s4405_s3 + $0xd8] sm:$0xf0] }
  0x51   :  { %1049 = vmatpush.bf16.msrb.mxu3 %v2295_v29  ;;  %v2755_v29 = vld [vmem:[%s4405_s3 + $0x54] sm:$0xf0] }
  0x8e   :  { %v114_v28 = vpop.f32.mrf.mxu2 }
  0x8f   :  { %v115_v30 = vadd.f32 %v114_v28, %v53_v21  ;;  %v127_v31 = vpop.f32.mrf.mxu3  ;;  %v2410_v21 = vld [vmem:[%s4405_s3 + $0x3e8] sm:$0xf] }
  0x90   :  { %v128_v32 = vadd.f32 %v127_v31, %v54_v22  ;;  %v2871_v22 = vld [vmem:[%s4405_s3 + $0x3f4] sm:$0xf0]  ;;  %v1946_v28 = vld [vmem:[%s4405_s3 + $0x48] sm:$0xf]  ;;  %v2283_v31 = vor.u32 %v2839_v20, %v2282_v19  ;;  %v2219_v19 = vor.u32 %v2823_v9, %v2218_v8  ;;  %v2833_v8 = vld [vmem:[%s4405_s3 + $0x2cc] sm:$0xf] }
  0x91   :  { %v157_v18 = vpack.c.bf16 %v115_v30, %v115_v30  ;;  %v1947_v38 = vor.u32 %v2755_v29, %v1946_v28  ;;  %v2765_v28 = vld [vmem:[%s4405_s3 + $0xac] sm:$0xf]  ;;  %v1996_v29 = vld [vmem:[%s4405_s3 + $0xb8] sm:$0xf0] }
  0x92   :  { %v158_v33 = vpack.c.bf16 %v128_v32, %v128_v32  ;;  %v2411_v32 = vor.u32 %v2871_v22, %v2410_v21  ;;  %v2202_v21 = vld [vmem:[%s4405_s3 + $0x248] sm:$0xf]  ;;  %v2819_v22 = vld [vmem:[%s4405_s3 + $0x254] sm:$0xf0]  ;;  %v2268_v9 = vld [vmem:[%s4405_s3 + $0x2d8] sm:$0xf0] }
  0x93   :  { %v161_v34 = vunpack.c.l.bf16 %v157_v18  ;;  %v2074_v18 = vld [vmem:[%s4405_s3 + $0x148] sm:$0xf] }
  0x94   :  { %v162_v35 = vunpack.c.l.bf16 %v158_v33  ;;  %v2787_v33 = vld [vmem:[%s4405_s3 + $0x154] sm:$0xf0] }
  0x95   :  { %2956 = vtanh.f32 %v161_v34  ;;  %v2266_v34 = vld [vmem:[%s4405_s3 + $0x2c8] sm:$0xf]  ;;  %v2075_v39 = vor.u32 %v2787_v33, %v2074_v18  ;;  %v2203_v18 = vor.u32 %v2819_v22, %v2202_v21  ;;  %v2829_v21 = vld [vmem:[%s4405_s3 + $0x2ac] sm:$0xf]  ;;  %v2252_v22 = vld [vmem:[%s4405_s3 + $0x2b8] sm:$0xf0] }
  0x96   :  { %2958 = vtanh.f32 %v162_v35  ;;  %v116_v36 = vpop.f32.mrf.mxu2  ;;  %v2835_v35 = vld [vmem:[%s4405_s3 + $0x2d4] sm:$0xf0] }
  0x97   :  { %v129_v37 = vpop.f32.mrf.mxu3  ;;  %v2394_v36 = vld [vmem:[%s4405_s3 + $0x3c8] sm:$0xf] }
  0x98   :  { %v2867_v37 = vld [vmem:[%s4405_s3 + $0x3d4] sm:$0xf0] }
  0x9b   :  { %v2957_v42 = vpop.eup %2956 }
  0x9c   :  { %v2959_v45 = vpop.eup %2958  ;;  %v3528_v46 = vpack.c.bf16 %v2957_v42, %v2957_v42  ;;  %v2267_v42 = vor.u32 %v2835_v35, %v2266_v34  ;;  %v2186_v34 = vld [vmem:[%s4405_s3 + $0x228] sm:$0xf]  ;;  %v2815_v35 = vld [vmem:[%s4405_s3 + $0x234] sm:$0xf0] }
  0x9d   :  { %v3536_v51 = vpack.c.bf16 %v2959_v45, %v2959_v45  ;;  %v2783_v45 = vld [vmem:[%s4405_s3 + $0x134] sm:$0xf0] }
  0x9e   :  { %v140_v54 = vpop.f32.mrf.mxu2  ;;  %959 = vmatmul.bf16.vlgmr.msra.gmra.mxu0 %v3528_v46 }
  0x9f   :  { %v141_v55 = vadd.f32 %v140_v54, %v55_v43  ;;  %v153_v56 = vpop.f32.mrf.mxu3  ;;  %972 = vmatmul.bf16.vlgmr.msra.gmra.mxu1 %v3536_v51  ;;  %1055 = vmatpush.bf16.msra.mxu0 %v2027_v44  ;;  %v2395_v43 = vor.u32 %v2867_v37, %v2394_v36  ;;  %v2058_v44 = vld [vmem:[%s4405_s3 + $0x128] sm:$0xf]  ;;  %v1999_v36 = vor.u32 %v2765_v28, %v1996_v29  ;;  %v2745_v28 = vld [vmem:[%s4405_s3 + $0xc] sm:$0xf]  ;;  %v1916_v29 = vld [vmem:[%s4405_s3 + $0x18] sm:$0xf0] }
  0xa0   :  { %v154_v58 = vadd.f32 %v153_v56, %v56_v47  ;;  %1068 = vmatpush.bf16.msra.mxu1 %v2155_v48  ;;  %v2250_v47 = vld [vmem:[%s4405_s3 + $0x2a8] sm:$0xf]  ;;  %v2831_v48 = vld [vmem:[%s4405_s3 + $0x2b4] sm:$0xf0]  ;;  %v2059_v53 = vor.u32 %v2783_v45, %v2058_v44  ;;  %v2187_v44 = vor.u32 %v2815_v35, %v2186_v34  ;;  %v2825_v34 = vld [vmem:[%s4405_s3 + $0x28c] sm:$0xf] }
  0xa1   :  { %v159_v62 = vpack.c.bf16 %v141_v55, %v141_v55  ;;  %v1914_v54 = vld [vmem:[%s4405_s3 + $0x8] sm:$0xf]  ;;  %v2747_v55 = vld [vmem:[%s4405_s3 + $0x14] sm:$0xf0]  ;;  %v2236_v35 = vld [vmem:[%s4405_s3 + $0x298] sm:$0xf0] }
  0xa2   :  { %v160_v1 = vpack.c.bf16 %v154_v58, %v154_v58  ;;  %v2042_v56 = vld [vmem:[%s4405_s3 + $0x108] sm:$0xf]  ;;  %v2379_v58 = vor.u32 %v2863_v50, %v2378_v49  ;;  %v1983_v50 = vor.u32 %v2761_v40, %v1980_v41  ;;  %v1919_v40 = vor.u32 %v2745_v28, %v1916_v29  ;;  %v2522_v28 = vld [vmem:[%s4407_s5 + $0xd0] sm:$0xf] }
  0xa3   :  { %v163_v2 = vunpack.c.l.bf16 %v159_v62  ;;  %1056 = vmatpush.bf16.msra.mxu0 %v2011_v57  ;;  %v2251_v57 = vor.u32 %v2831_v48, %v2250_v47  ;;  %v2362_v62 = vld [vmem:[%s4405_s3 + $0x388] sm:$0xf]  ;;  %v2811_v48 = vld [vmem:[%s4405_s3 + $0x214] sm:$0xf0] }
  0xa4   :  { %v164_v4 = vunpack.c.l.bf16 %v160_v1  ;;  %1069 = vmatpush.bf16.msra.mxu1 %v2139_v59  ;;  %v2779_v59 = vld [vmem:[%s4405_s3 + $0x114] sm:$0xf0]  ;;  %v2028_v1 = vld [vmem:[%s4405_s3 + $0xf8] sm:$0xf0]  ;;  %v2363_v7 = vor.u32 %v2859_v63, %v2362_v62  ;;  %v2170_v47 = vld [vmem:[%s4405_s3 + $0x208] sm:$0xf] }
  0xa5   :  { %2960 = vtanh.f32 %v163_v2  ;;  %v2805_v2 = vld [vmem:[%s4405_s3 + $0x1ec] sm:$0xf]  ;;  %v2298_v49 = vld [vmem:[%s4405_s3 + $0x308] sm:$0xf]  ;;  %v2171_v62 = vor.u32 %v2811_v48, %v2170_v47  ;;  %v2348_v48 = vld [vmem:[%s4405_s3 + $0x378] sm:$0xf0] }
  0xa6   :  { %2962 = vtanh.f32 %v164_v4  ;;  %v142_v10 = vpop.f32.mrf.mxu2  ;;  %v1915_v4 = vor.u32 %v2747_v55, %v1914_v54  ;;  %v2757_v54 = vld [vmem:[%s4405_s3 + $0x6c] sm:$0xf]  ;;  %v1964_v55 = vld [vmem:[%s4405_s3 + $0x78] sm:$0xf0] }
  0xa7   :  { %v155_v11 = vpop.f32.mrf.mxu3  ;;  %1057 = vmatpush.bf16.msra.mxu0 %v1995_v3  ;;  %v2156_v3 = vld [vmem:[%s4405_s3 + $0x1f8] sm:$0xf0]  ;;  %v2031_v10 = vor.u32 %v2773_v0, %v2028_v1  ;;  %v1967_v0 = vor.u32 %v2757_v54, %v1964_v55  ;;  %v2853_v47 = vld [vmem:[%s4405_s3 + $0x36c] sm:$0xf] }
  0xa8   :  { %1070 = vmatpush.bf16.msra.mxu1 %v2123_v5  ;;  %v2043_v5 = vor.u32 %v2779_v59, %v2042_v56  ;;  %v2159_v11 = vor.u32 %v2805_v2, %v2156_v3  ;;  %v2789_v56 = vld [vmem:[%s4405_s3 + $0x16c] sm:$0xf]  ;;  %v2284_v59 = vld [vmem:[%s4405_s3 + $0x2f8] sm:$0xf0] }
  0xa9   :  { %v2753_v2 = vld [vmem:[%s4405_s3 + $0x4c] sm:$0xf]  ;;  %v1948_v3 = vld [vmem:[%s4405_s3 + $0x58] sm:$0xf0] }
  0xaa   :  { %v2204_v54 = vld [vmem:[%s4405_s3 + $0x258] sm:$0xf0]  ;;  %v2849_v55 = vld [vmem:[%s4405_s3 + $0x34c] sm:$0xf] }
  0xab   :  { %v2961_v23 = vpop.eup %2960  ;;  %1058 = vmatpush.bf16.msra.mxu0 %v1979_v12  ;;  %v2346_v12 = vld [vmem:[%s4405_s3 + $0x368] sm:$0xf] }
  0xac   :  { %v2963_v24 = vpop.eup %2962  ;;  %v3594_v25 = vpack.c.bf16 %v2961_v23, %v2961_v23  ;;  %1071 = vmatpush.bf16.msra.mxu1 %v2107_v13  ;;  %v2855_v13 = vld [vmem:[%s4405_s3 + $0x374] sm:$0xf0]  ;;  %v2015_v23 = vor.u32 %v2769_v14, %v2012_v15  ;;  %v2749_v14 = vld [vmem:[%s4405_s3 + $0x2c] sm:$0xf]  ;;  %v1932_v15 = vld [vmem:[%s4405_s3 + $0x38] sm:$0xf0] }
  0xad   :  { %v3602_v30 = vpack.c.bf16 %v2963_v24, %v2963_v24  ;;  %v2347_v20 = vor.u32 %v2855_v13, %v2346_v12  ;;  %v2143_v24 = vor.u32 %v2801_v16, %v2140_v17  ;;  %v1951_v12 = vor.u32 %v2753_v2, %v1948_v3  ;;  %v2300_v2 = vld [vmem:[%s4405_s3 + $0x318] sm:$0xf0] }
  0xae   :  { %985 = vmatmul.bf16.vlgmr.msra.gmra.mxu2 %v3594_v25  ;;  %1011 = vmatmul.bf16.vlgmr.msrb.gmra.mxu0 %v3528_v46  ;;  %v2271_v16 = vor.u32 %v2833_v8, %v2268_v9  ;;  %v2458_v8 = vld [vmem:[%s4407_s5 + $0x50] sm:$0xf]  ;;  %v2883_v9 = vld [vmem:[%s4407_s5 + $0x54] sm:$0xf0] }
  0xaf   :  { %998 = vmatmul.bf16.vlgmr.msra.gmra.mxu3 %v3602_v30  ;;  %1024 = vmatmul.bf16.vlgmr.msrb.gmra.mxu1 %v3536_v51 }
  0xb0   :  { %1059 = vmatpush.bf16.msra.mxu0 %v1963_v26  ;;  %1072 = vmatpush.bf16.msra.mxu1 %v2091_v27  ;;  %v2330_v26 = vld [vmem:[%s4405_s3 + $0x348] sm:$0xf]  ;;  %v2851_v27 = vld [vmem:[%s4405_s3 + $0x354] sm:$0xf0] }
  0xb1   :  { %1081 = vmatpush.bf16.msra.mxu2 %v2283_v31  ;;  %1094 = vmatpush.bf16.msra.mxu3 %v2411_v32  ;;  %v2797_v31 = vld [vmem:[%s4405_s3 + $0x1ac] sm:$0xf]  ;;  %v2124_v32 = vld [vmem:[%s4405_s3 + $0x1b8] sm:$0xf0]  ;;  %v2331_v33 = vor.u32 %v2851_v27, %v2330_v26  ;;  %v1935_v26 = vor.u32 %v2749_v14, %v1932_v15  ;;  %v2538_v14 = vld [vmem:[%s4407_s5 + $0xf0] sm:$0xf] }
  0xb2   :  { %v2127_v37 = vor.u32 %v2797_v31, %v2124_v32  ;;  %v2255_v31 = vor.u32 %v2829_v21, %v2252_v22  ;;  %v2903_v15 = vld [vmem:[%s4407_s5 + $0xf4] sm:$0xf0]  ;;  %v2530_v21 = vld [vmem:[%s4407_s5 + $0xe0] sm:$0xf] }
  0xb4   :  { %1060 = vmatpush.bf16.msra.mxu0 %v1947_v38  ;;  %1073 = vmatpush.bf16.msra.mxu1 %v2075_v39  ;;  %v2314_v38 = vld [vmem:[%s4405_s3 + $0x328] sm:$0xf]  ;;  %v2847_v39 = vld [vmem:[%s4405_s3 + $0x334] sm:$0xf0] }
  0xb5   :  { %1082 = vmatpush.bf16.msra.mxu2 %v2267_v42  ;;  %1095 = vmatpush.bf16.msra.mxu3 %v2395_v43  ;;  %v2793_v42 = vld [vmem:[%s4405_s3 + $0x18c] sm:$0xf]  ;;  %v2108_v43 = vld [vmem:[%s4405_s3 + $0x198] sm:$0xf0]  ;;  %v2315_v45 = vor.u32 %v2847_v39, %v2314_v38  ;;  %v2474_v38 = vld [vmem:[%s4407_s5 + $0x70] sm:$0xf] }
  0xb6   :  { %v2887_v39 = vld [vmem:[%s4407_s5 + $0x74] sm:$0xf0] }
  0xb8   :  { %1061 = vmatpush.bf16.msra.mxu0 %v1931_v52  ;;  %1074 = vmatpush.bf16.msra.mxu1 %v2059_v53  ;;  %v2111_v52 = vor.u32 %v2793_v42, %v2108_v43  ;;  %v2843_v53 = vld [vmem:[%s4405_s3 + $0x314] sm:$0xf0]  ;;  %v2239_v42 = vor.u32 %v2825_v34, %v2236_v35  ;;  %v2514_v34 = vld [vmem:[%s4407_s5 + $0xc0] sm:$0xf] }
  0xb9   :  { %1083 = vmatpush.bf16.msra.mxu2 %v2251_v57  ;;  %1096 = vmatpush.bf16.msra.mxu3 %v2379_v58  ;;  %v2092_v57 = vld [vmem:[%s4405_s3 + $0x178] sm:$0xf0]  ;;  %v2837_v58 = vld [vmem:[%s4405_s3 + $0x2ec] sm:$0xf]  ;;  %v2299_v63 = vor.u32 %v2843_v53, %v2298_v49  ;;  %v2475_v49 = vor.u32 %v2887_v39, %v2474_v38 }
  0xba   :  { %v2095_v1 = vor.u32 %v2789_v56, %v2092_v57  ;;  %v2817_v53 = vld [vmem:[%s4405_s3 + $0x24c] sm:$0xf]  ;;  %v2332_v56 = vld [vmem:[%s4405_s3 + $0x358] sm:$0xf0] }
  0xbb   :  { %v2207_v57 = vor.u32 %v2817_v53, %v2204_v54  ;;  %v2476_v38 = vld [vmem:[%s4407_s5 + $0x78] sm:$0xf0]  ;;  %v2498_v54 = vld [vmem:[%s4407_s5 + $0xa0] sm:$0xf] }
  0xbc   :  { %1062 = vmatpush.bf16.msra.mxu0 %v1915_v4  ;;  %1075 = vmatpush.bf16.msra.mxu1 %v2043_v5  ;;  %v2287_v4 = vor.u32 %v2837_v58, %v2284_v59  ;;  %v2415_v5 = vor.u32 %v2869_v60, %v2412_v61  ;;  %v2335_v58 = vor.u32 %v2849_v55, %v2332_v56  ;;  %v2813_v59 = vld [vmem:[%s4405_s3 + $0x22c] sm:$0xf]  ;;  %v2188_v60 = vld [vmem:[%s4405_s3 + $0x238] sm:$0xf0]  ;;  %v2893_v55 = vld [vmem:[%s4407_s5 + $0xa4] sm:$0xf0] }
  0xbd   :  { %1084 = vmatpush.bf16.msra.mxu2 %v2235_v6  ;;  %1097 = vmatpush.bf16.msra.mxu3 %v2363_v7  ;;  %v2785_v6 = vld [vmem:[%s4405_s3 + $0x14c] sm:$0xf]  ;;  %v2076_v7 = vld [vmem:[%s4405_s3 + $0x158] sm:$0xf0]  ;;  %v2594_v56 = vld [vmem:[%s4407_s5 + $0x160] sm:$0xf] }
  0xbe   :  { %1037 = vmatmul.bf16.vlgmr.msrb.gmra.mxu2 %v3594_v25  ;;  %v2079_v13 = vor.u32 %v2785_v6, %v2076_v7  ;;  %v2845_v61 = vld [vmem:[%s4405_s3 + $0x32c] sm:$0xf]  ;;  %v2885_v6 = vld [vmem:[%s4407_s5 + $0x64] sm:$0xf0] }
  0xbf   :  { %1050 = vmatmul.bf16.vlgmr.msrb.gmra.mxu3 %v3602_v30  ;;  %1063 = vmatmul.bf16.vlgmr.msra.gmra.mxu0 %v3528_v46 }
  0xc0   :  { %1107 = vmatpush.bf16.msrb.mxu0 %v2031_v10  ;;  %1120 = vmatpush.bf16.msrb.mxu1 %v2159_v11  ;;  %v2865_v10 = vld [vmem:[%s4405_s3 + $0x3cc] sm:$0xf]  ;;  %v2396_v11 = vld [vmem:[%s4405_s3 + $0x3d8] sm:$0xf0] }
  0xc1   :  { %1076 = vmatmul.bf16.vlgmr.msra.gmra.mxu1 %v3536_v51  ;;  %1085 = vmatpush.bf16.msra.mxu2 %v2219_v19  ;;  %v2399_v17 = vor.u32 %v2865_v10, %v2396_v11  ;;  %v2781_v19 = vld [vmem:[%s4405_s3 + $0x12c] sm:$0xf]  ;;  %v2881_v10 = vld [vmem:[%s4407_s5 + $0x44] sm:$0xf0]  ;;  %v2442_v11 = vld [vmem:[%s4407_s5 + $0x30] sm:$0xf] }
  0xc2   :  { %1098 = vmatpush.bf16.msra.mxu3 %v2347_v20  ;;  %v2060_v20 = vld [vmem:[%s4405_s3 + $0x138] sm:$0xf0] }
  0xc3   :  { %v2063_v27 = vor.u32 %v2781_v19, %v2060_v20  ;;  %v2434_v19 = vld [vmem:[%s4407_s5 + $0x20] sm:$0xf]  ;;  %v2877_v20 = vld [vmem:[%s4407_s5 + $0x24] sm:$0xf0] }
  0xc4   :  { %1108 = vmatpush.bf16.msrb.mxu0 %v2015_v23  ;;  %1121 = vmatpush.bf16.msrb.mxu1 %v2143_v24  ;;  %v2861_v23 = vld [vmem:[%s4405_s3 + $0x3ac] sm:$0xf]  ;;  %v2380_v24 = vld [vmem:[%s4405_s3 + $0x3b8] sm:$0xf0]  ;;  %v2435_v22 = vor.u32 %v2877_v20, %v2434_v19 }
  0xc5   :  { %1086 = vmatpush.bf16.msra.mxu2 %v2203_v18  ;;  %v2383_v32 = vor.u32 %v2861_v23, %v2380_v24  ;;  %v2777_v18 = vld [vmem:[%s4405_s3 + $0x10c] sm:$0xf]  ;;  %v2901_v23 = vld [vmem:[%s4407_s5 + $0xe4] sm:$0xf0] }
  0xc6   :  { %1099 = vmatpush.bf16.msra.mxu3 %v2331_v33  ;;  %v2044_v33 = vld [vmem:[%s4405_s3 + $0x118] sm:$0xf0]  ;;  %v2531_v24 = vor.u32 %v2901_v23, %v2530_v21  ;;  %v2570_v21 = vld [vmem:[%s4407_s5 + $0x130] sm:$0xf] }
  0xc7   :  { %v2047_v41 = vor.u32 %v2777_v18, %v2044_v33  ;;  %v2418_v18 = vld [vmem:[%s4407_s5] sm:$0xf]  ;;  %v2873_v33 = vld [vmem:[%s4407_s5 + $0x4] sm:$0xf0] }
  0xc8   :  { %1109 = vmatpush.bf16.msrb.mxu0 %v1999_v36  ;;  %1122 = vmatpush.bf16.msrb.mxu1 %v2127_v37  ;;  %v2857_v36 = vld [vmem:[%s4405_s3 + $0x38c] sm:$0xf]  ;;  %v2364_v37 = vld [vmem:[%s4405_s3 + $0x398] sm:$0xf0]  ;;  %v2419_v35 = vor.u32 %v2873_v33, %v2418_v18 }
  0xc9   :  { %1087 = vmatpush.bf16.msra.mxu2 %v2187_v44  ;;  %v2367_v43 = vor.u32 %v2857_v36, %v2364_v37  ;;  %v2821_v44 = vld [vmem:[%s4405_s3 + $0x26c] sm:$0xf]  ;;  %v2897_v36 = vld [vmem:[%s4407_s5 + $0xc4] sm:$0xf0]  ;;  %v2886_v37 = vld [vmem:[%s4407_s5 + $0x74] sm:$0xf] }
  0xca   :  { %1100 = vmatpush.bf16.msra.mxu3 %v2315_v45  ;;  %v2220_v45 = vld [vmem:[%s4405_s3 + $0x278] sm:$0xf0]  ;;  %v2515_v39 = vor.u32 %v2897_v36, %v2514_v34  ;;  %v2562_v34 = vld [vmem:[%s4407_s5 + $0x120] sm:$0xf] }
  0xcc   :  { %1110 = vmatpush.bf16.msrb.mxu0 %v1983_v50  ;;  %1123 = vmatpush.bf16.msrb.mxu1 %v2111_v52  ;;  %v2223_v50 = vor.u32 %v2821_v44, %v2220_v45  ;;  %v2351_v52 = vor.u32 %v2853_v47, %v2348_v48  ;;  %v2919_v45 = vld [vmem:[%s4407_s5 + $0x174] sm:$0xf0]  ;;  %v2884_v47 = vld [vmem:[%s4407_s5 + $0x64] sm:$0xf]  ;;  %v2468_v48 = vld [vmem:[%s4407_s5 + $0x68] sm:$0xf0] }
  0xcd   :  { %1088 = vmatpush.bf16.msra.mxu2 %v2171_v62 }
  0xce   :  { %1101 = vmatpush.bf16.msra.mxu3 %v2299_v63  ;;  %v2809_v63 = vld [vmem:[%s4405_s3 + $0x20c] sm:$0xf] }
  0xd0   :  { %1111 = vmatpush.bf16.msrb.mxu0 %v1967_v0  ;;  %1124 = vmatpush.bf16.msrb.mxu1 %v2095_v1  ;;  %v2172_v0 = vld [vmem:[%s4405_s3 + $0x218] sm:$0xf0]  ;;  %v2841_v1 = vld [vmem:[%s4405_s3 + $0x30c] sm:$0xf] }
  0xd1   :  { %1133 = vmatpush.bf16.msrb.mxu2 %v2287_v4  ;;  %1102 = vmatmul.bf16.vlgmr.msra.gmra.mxu3 %v3602_v30  ;;  %v2175_v3 = vor.u32 %v2809_v63, %v2172_v0  ;;  %v2303_v4 = vor.u32 %v2841_v1, %v2300_v2  ;;  %v2586_v63 = vld [vmem:[%s4407_s5 + $0x150] sm:$0xf]  ;;  %v2915_v1 = vld [vmem:[%s4407_s5 + $0x154] sm:$0xf0]  ;;  %v2880_v2 = vld [vmem:[%s4407_s5 + $0x44] sm:$0xf] }
  0xd2   :  { %1146 = vmatpush.bf16.msrb.mxu3 %v2415_v5  ;;  %1089 = vmatmul.bf16.vlgmr.msra.gmra.mxu2 %v3594_v25  ;;  %v2466_v5 = vld [vmem:[%s4407_s5 + $0x60] sm:$0xf] }
  0xd3   :  { %v2467_v7 = vor.u32 %v2885_v6, %v2466_v5  ;;  %v4061_v6 = vld [vmem:[%s4406_s4] sm:$0xf] }
  0xd4   :  { %1112 = vmatpush.bf16.msrb.mxu0 %v1951_v12  ;;  %1125 = vmatpush.bf16.msrb.mxu1 %v2079_v13  ;;  %v2879_v13 = vld [vmem:[%s4407_s5 + $0x34] sm:$0xf0]  ;;  %v303_v20 = vperm.slane %v4061_v6, 0 }
  0xd5   :  { %1134 = vmatpush.bf16.msrb.mxu2 %v2271_v16  ;;  %v2539_v16 = vor.u32 %v2903_v15, %v2538_v14 }
  0xd6   :  { %1147 = vmatpush.bf16.msrb.mxu3 %v2399_v17  ;;  %v2443_v17 = vor.u32 %v2879_v13, %v2442_v11  ;;  %v2913_v11 = vld [vmem:[%s4407_s5 + $0x144] sm:$0xf0]  ;;  %v2444_v13 = vld [vmem:[%s4407_s5 + $0x38] sm:$0xf0] }
  0xd8   :  { %1113 = vmatpush.bf16.msrb.mxu0 %v1935_v26  ;;  %1126 = vmatpush.bf16.msrb.mxu1 %v2063_v27  ;;  %v2426_v26 = vld [vmem:[%s4407_s5 + $0x10] sm:$0xf]  ;;  %v2875_v27 = vld [vmem:[%s4407_s5 + $0x14] sm:$0xf0] }
  0xd9   :  { %1135 = vmatpush.bf16.msrb.mxu2 %v2255_v31  ;;  %v2427_v29 = vor.u32 %v2875_v27, %v2426_v26  ;;  %v2899_v31 = vld [vmem:[%s4407_s5 + $0xd4] sm:$0xf0]  ;;  %v2436_v26 = vld [vmem:[%s4407_s5 + $0x28] sm:$0xf0]  ;;  %v2900_v27 = vld [vmem:[%s4407_s5 + $0xe4] sm:$0xf] }
  0xda   :  { %1148 = vmatpush.bf16.msrb.mxu3 %v2383_v32  ;;  %v2523_v32 = vor.u32 %v2899_v31, %v2522_v28 }
  0xdc   :  { %1114 = vmatpush.bf16.msrb.mxu0 %v1919_v40  ;;  %1127 = vmatpush.bf16.msrb.mxu1 %v2047_v41  ;;  %v2479_v40 = vor.u32 %v2886_v37, %v2476_v38  ;;  %v2506_v41 = vld [vmem:[%s4407_s5 + $0xb0] sm:$0xf]  ;;  %v2874_v37 = vld [vmem:[%s4407_s5 + $0x14] sm:$0xf]  ;;  %v2428_v38 = vld [vmem:[%s4407_s5 + $0x18] sm:$0xf0] }
  0xdd   :  { %1136 = vmatpush.bf16.msrb.mxu2 %v2239_v42  ;;  %v2895_v42 = vld [vmem:[%s4407_s5 + $0xb4] sm:$0xf0] }
  0xde   :  { %1149 = vmatpush.bf16.msrb.mxu3 %v2367_v43  ;;  %v2602_v43 = vld [vmem:[%s4407_s5 + $0x170] sm:$0xf]  ;;  %v2507_v44 = vor.u32 %v2895_v42, %v2506_v41  ;;  %v2524_v41 = vld [vmem:[%s4407_s5 + $0xd8] sm:$0xf0] }
  0xdf   :  { %1115 = vmatmul.bf16.vlgmr.msrb.gmra.mxu0 %v3528_v46  ;;  %1128 = vmatmul.bf16.vlgmr.msrb.gmra.mxu1 %v3536_v51  ;;  %v2316_v46 = vld [vmem:[%s4405_s3 + $0x338] sm:$0xf0]  ;;  %v2191_v51 = vor.u32 %v2813_v59, %v2188_v60  ;;  %v2882_v59 = vld [vmem:[%s4407_s5 + $0x54] sm:$0xf] }
  0xe0   :  { %1565 = vmatpush.bf16.msra.mxu0 %v2475_v49  ;;  %v2319_v62 = vor.u32 %v2845_v61, %v2316_v46  ;;  %1578 = vmatpush.bf16.msra.mxu1 %v2539_v16  ;;  %v2603_v49 = vor.u32 %v2919_v45, %v2602_v43  ;;  %v2460_v60 = vld [vmem:[%s4407_s5 + $0x58] sm:$0xf0]  ;;  %v2902_v16 = vld [vmem:[%s4407_s5 + $0xf4] sm:$0xf]  ;;  %v2907_v45 = vld [vmem:[%s4407_s5 + $0x114] sm:$0xf0] }
  0xe1   :  { %1137 = vmatpush.bf16.msrb.mxu2 %v2223_v50  ;;  %v2471_v50 = vor.u32 %v2884_v47, %v2468_v48  ;;  %v2463_v46 = vor.u32 %v2882_v59, %v2460_v60 }
  0xe2   :  { %1150 = vmatpush.bf16.msrb.mxu3 %v2351_v52 }
  0xe4   :  { %1566 = vmatpush.bf16.msra.mxu0 %v2467_v7  ;;  %1579 = vmatpush.bf16.msra.mxu1 %v2531_v24  ;;  %v2876_v24 = vld [vmem:[%s4407_s5 + $0x24] sm:$0xf] }
  0xe5   :  { %1138 = vmatpush.bf16.msrb.mxu2 %v2207_v57  ;;  %v2499_v57 = vor.u32 %v2893_v55, %v2498_v54  ;;  %v2439_v28 = vor.u32 %v2876_v24, %v2436_v26 }
  0xe6   :  { %1151 = vmatpush.bf16.msrb.mxu3 %v2335_v58  ;;  %v2917_v58 = vld [vmem:[%s4407_s5 + $0x164] sm:$0xf0] }
  0xe7   :  { %v2595_v61 = vor.u32 %v2917_v58, %v2594_v56  ;;  %v2516_v56 = vld [vmem:[%s4407_s5 + $0xc8] sm:$0xf0] }
  0xe8   :  { %1580 = vmatpush.bf16.msra.mxu1 %v2523_v32 }
  0xe9   :  { %1139 = vmatpush.bf16.msrb.mxu2 %v2191_v51  ;;  %v2490_v51 = vld [vmem:[%s4407_s5 + $0x90] sm:$0xf] }
  0xea   :  { %1152 = vmatpush.bf16.msrb.mxu3 %v2319_v62  ;;  %v2891_v62 = vld [vmem:[%s4407_s5 + $0x94] sm:$0xf0] }
  0xeb   :  { %v2491_v0 = vor.u32 %v2891_v62, %v2490_v51  ;;  %v2666_v51 = vld [vmem:[%s4407_s5 + $0x1f0] sm:$0xf] }
  0xec   :  { %1581 = vmatpush.bf16.msra.mxu1 %v2515_v39  ;;  %v2898_v39 = vld [vmem:[%s4407_s5 + $0xd4] sm:$0xf] }
  0xed   :  { %1140 = vmatpush.bf16.msrb.mxu2 %v2175_v3  ;;  %v2452_v3 = vld [vmem:[%s4407_s5 + $0x48] sm:$0xf0]  ;;  %v2527_v42 = vor.u32 %v2898_v39, %v2524_v41  ;;  %v2888_v41 = vld [vmem:[%s4407_s5 + $0x84] sm:$0xf] }
  0xee   :  { %1153 = vmatpush.bf16.msrb.mxu3 %v2303_v4  ;;  %v2587_v4 = vor.u32 %v2915_v1, %v2586_v63  ;;  %v2455_v5 = vor.u32 %v2880_v2, %v2452_v3  ;;  %v2935_v63 = vld [vmem:[%s4407_s5 + $0x1f4] sm:$0xf0]  ;;  %v2508_v1 = vld [vmem:[%s4407_s5 + $0xb8] sm:$0xf0] }
  0xef   :  { %v2667_v3 = vor.u32 %v2935_v63, %v2666_v51  ;;  %v2564_v51 = vld [vmem:[%s4407_s5 + $0x128] sm:$0xf0] }
  0xf0   :  { %1141 = vmatmul.bf16.vlgmr.msrb.gmra.mxu2 %v3594_v25  ;;  %v2459_v25 = vor.u32 %v2883_v9, %v2458_v8  ;;  %1582 = vmatpush.bf16.msra.mxu1 %v2507_v44  ;;  %v2482_v9 = vld [vmem:[%s4407_s5 + $0x80] sm:$0xf]  ;;  %v2554_v44 = vld [vmem:[%s4407_s5 + $0x110] sm:$0xf] }
  0xf1   :  { %1154 = vmatmul.bf16.vlgmr.msrb.gmra.mxu3 %v3602_v30  ;;  %v2450_v30 = vld [vmem:[%s4407_s5 + $0x40] sm:$0xf]  ;;  %1591 = vmatpush.bf16.msra.mxu2 %v2603_v49  ;;  %v2555_v48 = vor.u32 %v2907_v45, %v2554_v44  ;;  %v2872_v49 = vld [vmem:[%s4407_s5 + $0x4] sm:$0xf] }
  0xf2   :  { %1567 = vmatpush.bf16.msra.mxu0 %v2459_v25  ;;  %v2451_v12 = vor.u32 %v2881_v10, %v2450_v30  ;;  %v2889_v25 = vld [vmem:[%s4407_s5 + $0x84] sm:$0xf0]  ;;  %v2578_v30 = vld [vmem:[%s4407_s5 + $0x140] sm:$0xf]  ;;  %1604 = vmatpush.bf16.msra.mxu3 %v2667_v3  ;;  %v2923_v3 = vld [vmem:[%s4407_s5 + $0x194] sm:$0xf0] }
  0xf3   :  { %v2483_v10 = vor.u32 %v2889_v25, %v2482_v9  ;;  %v2579_v14 = vor.u32 %v2913_v11, %v2578_v30  ;;  %v304_v9 = vperm.slane %v4061_v6, 1  ;;  %v2658_v30 = vld [vmem:[%s4407_s5 + $0x1e0] sm:$0xf] }
  0xf4   :  { %1583 = vmatpush.bf16.msra.mxu1 %v2499_v57 }
  0xf5   :  { %1592 = vmatpush.bf16.msra.mxu2 %v2595_v61  ;;  %v2546_v61 = vld [vmem:[%s4407_s5 + $0x100] sm:$0xf] }
  0xf6   :  { %1568 = vmatpush.bf16.msra.mxu0 %v2451_v12  ;;  %v2878_v12 = vld [vmem:[%s4407_s5 + $0x34] sm:$0xf] }
  0xf7   :  { %v2447_v15 = vor.u32 %v2878_v12, %v2444_v13  ;;  %v2892_v13 = vld [vmem:[%s4407_s5 + $0xa4] sm:$0xf] }
  0xf8   :  { %1584 = vmatpush.bf16.msra.mxu1 %v2491_v0  ;;  %v2894_v0 = vld [vmem:[%s4407_s5 + $0xb4] sm:$0xf] }
  0xf9   :  { %1593 = vmatpush.bf16.msra.mxu2 %v2587_v4  ;;  %v2511_v4 = vor.u32 %v2894_v0, %v2508_v1 }
  0xfa   :  { %1569 = vmatpush.bf16.msra.mxu0 %v2443_v17  ;;  %v2540_v17 = vld [vmem:[%s4407_s5 + $0xf8] sm:$0xf0] }
  0xfb   :  { %v2543_v19 = vor.u32 %v2902_v16, %v2540_v17 }
  0xfc   :  { %1585 = vmatpush.bf16.msra.mxu1 %v2483_v10  ;;  %v2933_v10 = vld [vmem:[%s4407_s5 + $0x1e4] sm:$0xf0] }
  0xfd   :  { %1594 = vmatpush.bf16.msra.mxu2 %v2579_v14  ;;  %v2659_v12 = vor.u32 %v2933_v10, %v2658_v30  ;;  %v2500_v14 = vld [vmem:[%s4407_s5 + $0xa8] sm:$0xf0] }
  0xfe   :  { %1570 = vmatpush.bf16.msra.mxu0 %v2435_v22  ;;  %v2911_v22 = vld [vmem:[%s4407_s5 + $0x134] sm:$0xf0]  ;;  %v2503_v17 = vor.u32 %v2892_v13, %v2500_v14 }
  0xff   :  { %v2571_v23 = vor.u32 %v2911_v22, %v2570_v21  ;;  %1605 = vmatpush.bf16.msra.mxu3 %v2659_v12  ;;  %v2650_v21 = vld [vmem:[%s4407_s5 + $0x1d0] sm:$0xf]  ;;  %v2931_v22 = vld [vmem:[%s4407_s5 + $0x1d4] sm:$0xf0]  ;;  %v2921_v12 = vld [vmem:[%s4407_s5 + $0x184] sm:$0xf0] }
 0x100   :  { %1630 = vmatpush.bf16.msrb.mxu1 %v2543_v19  ;;  %v2596_v19 = vld [vmem:[%s4407_s5 + $0x168] sm:$0xf0] }
 0x101   :  { %1595 = vmatpush.bf16.msra.mxu2 %v2571_v23 }
 0x102   :  { %1571 = vmatpush.bf16.msra.mxu0 %v2427_v29  ;;  %v2532_v29 = vld [vmem:[%s4407_s5 + $0xe8] sm:$0xf0] }
 0x103   :  { %v2535_v32 = vor.u32 %v2900_v27, %v2532_v29  ;;  %v2651_v27 = vor.u32 %v2931_v22, %v2650_v21  ;;  %v2492_v29 = vld [vmem:[%s4407_s5 + $0x98] sm:$0xf0] }
 0x104   :  { %v2668_v22 = vld [vmem:[%s4407_s5 + $0x1f8] sm:$0xf0] }
 0x105   :  { %1631 = vmatpush.bf16.msrb.mxu1 %v2535_v32  ;;  %v2914_v32 = vld [vmem:[%s4407_s5 + $0x154] sm:$0xf]  ;;  %1606 = vmatpush.bf16.msra.mxu3 %v2651_v27 }
 0x106   :  { %1572 = vmatpush.bf16.msra.mxu0 %v2419_v35  ;;  %v2909_v35 = vld [vmem:[%s4407_s5 + $0x124] sm:$0xf0] }
 0x107   :  { %v2563_v36 = vor.u32 %v2909_v35, %v2562_v34 }
 0x109   :  { %1596 = vmatpush.bf16.msra.mxu2 %v2563_v36  ;;  %1632 = vmatpush.bf16.msrb.mxu1 %v2527_v42  ;;  %v2642_v36 = vld [vmem:[%s4407_s5 + $0x1c0] sm:$0xf]  ;;  %v2484_v42 = vld [vmem:[%s4407_s5 + $0x88] sm:$0xf0] }
 0x10a   :  { %1617 = vmatpush.bf16.msrb.mxu0 %v2479_v40  ;;  %v2431_v40 = vor.u32 %v2874_v37, %v2428_v38  ;;  %v2929_v37 = vld [vmem:[%s4407_s5 + $0x1c4] sm:$0xf0] }
 0x10d   :  { %1597 = vmatpush.bf16.msra.mxu2 %v2555_v48 }
 0x10e   :  { %1618 = vmatpush.bf16.msrb.mxu0 %v2471_v50  ;;  %v2420_v50 = vld [vmem:[%s4407_s5 + $0x8] sm:$0xf0] }
 0x10f   :  { %v2423_v55 = vor.u32 %v2872_v49, %v2420_v50  ;;  %v2634_v50 = vld [vmem:[%s4407_s5 + $0x1b0] sm:$0xf] }
 0x112   :  { %1619 = vmatpush.bf16.msrb.mxu0 %v2463_v46  ;;  %v2905_v46 = vld [vmem:[%s4407_s5 + $0x104] sm:$0xf0] }
 0x113   :  { %v2547_v62 = vor.u32 %v2905_v46, %v2546_v61  ;;  %v2925_v61 = vld [vmem:[%s4407_s5 + $0x1a4] sm:$0xf0]  ;;  %v2908_v46 = vld [vmem:[%s4407_s5 + $0x124] sm:$0xf] }
 0x114   :  { %v2567_v1 = vor.u32 %v2908_v46, %v2564_v51 }
 0x115   :  { %1598 = vmatpush.bf16.msra.mxu2 %v2547_v62 }
 0x116   :  { %1620 = vmatpush.bf16.msrb.mxu0 %v2455_v5  ;;  %v2918_v5 = vld [vmem:[%s4407_s5 + $0x174] sm:$0xf] }
 0x11a   :  { %1621 = vmatpush.bf16.msrb.mxu0 %v2447_v15  ;;  %v2916_v15 = vld [vmem:[%s4407_s5 + $0x164] sm:$0xf] }
 0x11b   :  { %v960_v52 = vpop.f32.mrf.mxu0 }
 0x11c   :  { %v4020_v53 = vpop.f32.mrf.mxu1  ;;  %v961_v18 = vadd.f32 %v960_v52, %v303_v20  ;;  %v2896_v52 = vld [vmem:[%s4407_s5 + $0xc4] sm:$0xf]  ;;  %v2599_v20 = vor.u32 %v2916_v15, %v2596_v19 }
 0x11d   :  { %v2519_v58 = vor.u32 %v2896_v52, %v2516_v56  ;;  %v2927_v52 = vld [vmem:[%s4407_s5 + $0x1b4] sm:$0xf0]  ;;  %v2904_v15 = vld [vmem:[%s4407_s5 + $0x104] sm:$0xf] }
 0x11e   :  { %1622 = vmatpush.bf16.msrb.mxu0 %v2439_v28  ;;  %v974_v43 = vadd.f32 %v4020_v53, %v961_v18  ;;  %v2890_v28 = vld [vmem:[%s4407_s5 + $0x94] sm:$0xf]  ;;  %v2588_v18 = vld [vmem:[%s4407_s5 + $0x158] sm:$0xf0]  ;;  %v2635_v56 = vor.u32 %v2927_v52, %v2634_v50 }
 0x11f   :  { %1633 = vmatpush.bf16.msrb.mxu1 %v2519_v58  ;;  %v2591_v34 = vor.u32 %v2914_v32, %v2588_v18  ;;  %v2572_v58 = vld [vmem:[%s4407_s5 + $0x138] sm:$0xf0] }
 0x122   :  { %1623 = vmatpush.bf16.msrb.mxu0 %v2431_v40  ;;  %v2643_v40 = vor.u32 %v2929_v37, %v2642_v36 }
 0x123   :  { %v962_v7 = vpop.f32.mrf.mxu0  ;;  %1634 = vmatpush.bf16.msrb.mxu1 %v2511_v4  ;;  %v305_v4 = vperm.slane %v4061_v6, 2 }
 0x124   :  { %v975_v8 = vpop.f32.mrf.mxu1  ;;  %v2604_v7 = vld [vmem:[%s4407_s5 + $0x178] sm:$0xf0]  ;;  %1607 = vmatpush.bf16.msra.mxu3 %v2643_v40 }
 0x125   :  { %v2607_v8 = vor.u32 %v2918_v5, %v2604_v7 }
 0x126   :  { %1624 = vmatpush.bf16.msrb.mxu0 %v2423_v55 }
 0x127   :  { %1643 = vmatpush.bf16.msrb.mxu2 %v2607_v8  ;;  %1635 = vmatpush.bf16.msrb.mxu1 %v2503_v17  ;;  %v2906_v8 = vld [vmem:[%s4407_s5 + $0x114] sm:$0xf] }
 0x128   :  { %1608 = vmatpush.bf16.msra.mxu3 %v2635_v56  ;;  %v2934_v17 = vld [vmem:[%s4407_s5 + $0x1f4] sm:$0xf] }
 0x129   :  { %v2671_v27 = vor.u32 %v2934_v17, %v2668_v22  ;;  %v2922_v56 = vld [vmem:[%s4407_s5 + $0x194] sm:$0xf] }
 0x12b   :  { %v4106_v31 = vpop.f32.mrf.mxu0  ;;  %1644 = vmatpush.bf16.msrb.mxu2 %v2599_v20 }
 0x12c   :  { %v4108_v33 = vpop.f32.mrf.mxu1  ;;  %v1013_v23 = vadd.f32 %v4106_v31, %v304_v9  ;;  %v2495_v31 = vor.u32 %v2890_v28, %v2492_v29  ;;  %v2556_v9 = vld [vmem:[%s4407_s5 + $0x118] sm:$0xf0]  ;;  %v2660_v29 = vld [vmem:[%s4407_s5 + $0x1e8] sm:$0xf0] }
 0x12d   :  { %v2559_v30 = vor.u32 %v2906_v8, %v2556_v9 }
 0x12e   :  { %v1026_v38 = vadd.f32 %v4108_v33, %v1013_v23  ;;  %1636 = vmatpush.bf16.msrb.mxu1 %v2495_v31  ;;  %v2487_v33 = vor.u32 %v2888_v41, %v2484_v42  ;;  %v2928_v42 = vld [vmem:[%s4407_s5 + $0x1c4] sm:$0xf] }
 0x12f   :  { %1645 = vmatpush.bf16.msrb.mxu2 %v2591_v34  ;;  %v2930_v34 = vld [vmem:[%s4407_s5 + $0x1d4] sm:$0xf] }
 0x131   :  { %v986_v47 = vpop.f32.mrf.mxu2 }
 0x132   :  { %v987_v53 = vadd.f32 %v986_v47, %v974_v43  ;;  %v999_v54 = vpop.f32.mrf.mxu3  ;;  %v2912_v43 = vld [vmem:[%s4407_s5 + $0x144] sm:$0xf]  ;;  %v2580_v47 = vld [vmem:[%s4407_s5 + $0x148] sm:$0xf0]  ;;  %1637 = vmatpush.bf16.msrb.mxu1 %v2487_v33  ;;  %v2636_v33 = vld [vmem:[%s4407_s5 + $0x1b8] sm:$0xf0] }
 0x133   :  { %v1014_v57 = vpop.f32.mrf.mxu0  ;;  %v2583_v49 = vor.u32 %v2912_v43, %v2580_v47  ;;  %v2644_v43 = vld [vmem:[%s4407_s5 + $0x1c8] sm:$0xf0] }
 0x134   :  { %v1000_v59 = vadd.f32 %v999_v54, %v987_v53  ;;  %v1027_v60 = vpop.f32.mrf.mxu1  ;;  %v2910_v57 = vld [vmem:[%s4407_s5 + $0x134] sm:$0xf] }
 0x135   :  { %1646 = vmatpush.bf16.msrb.mxu2 %v2583_v49  ;;  %v2575_v60 = vor.u32 %v2910_v57, %v2572_v58  ;;  %v2620_v57 = vld [vmem:[%s4407_s5 + $0x198] sm:$0xf0]  ;;  %v306_v58 = vperm.slane %v4061_v6, 3 }
 0x136   :  { %v1159_v2 = vpack.c.bf16 %v1000_v59, %v1000_v59  ;;  %v2626_v59 = vld [vmem:[%s4407_s5 + $0x1a0] sm:$0xf] }
 0x137   :  { %v2627_v63 = vor.u32 %v2925_v61, %v2626_v59  ;;  %v2623_v59 = vor.u32 %v2922_v56, %v2620_v57  ;;  %v2612_v61 = vld [vmem:[%s4407_s5 + $0x188] sm:$0xf0] }
 0x138   :  { %v1163_v25 = vunpack.c.l.bf16 %v1159_v2  ;;  %v2618_v2 = vld [vmem:[%s4407_s5 + $0x190] sm:$0xf] }
 0x139   :  { %v988_v11 = vpop.f32.mrf.mxu2  ;;  %1647 = vmatpush.bf16.msrb.mxu2 %v2575_v60  ;;  %1609 = vmatpush.bf16.msra.mxu3 %v2627_v63  ;;  %v2920_v60 = vld [vmem:[%s4407_s5 + $0x184] sm:$0xf] }
 0x13a   :  { %2964 = vtanh.f32 %v1163_v25  ;;  %v1001_v16 = vpop.f32.mrf.mxu3  ;;  %v2619_v25 = vor.u32 %v2923_v3, %v2618_v2  ;;  %v2610_v11 = vld [vmem:[%s4407_s5 + $0x180] sm:$0xf]  ;;  %v2615_v51 = vor.u32 %v2920_v60, %v2612_v61 }
 0x13b   :  { %v2611_v14 = vor.u32 %v2921_v12, %v2610_v11  ;;  %v2548_v16 = vld [vmem:[%s4407_s5 + $0x108] sm:$0xf0] }
 0x13c   :  { %v4197_v24 = vpop.f32.mrf.mxu0  ;;  %v2551_v21 = vor.u32 %v2904_v15, %v2548_v16  ;;  %v2941_v15 = vld [vmem:[%s4409_s7 + $0x28] sm:$0xff]  ;;  %v2940_v16 = vld [vmem:[%s4409_s7 + $0x20] sm:$0xff] }
 0x13d   :  { %1648 = vmatpush.bf16.msrb.mxu2 %v2567_v1  ;;  %v1065_v10 = vadd.f32 %v4197_v24, %v305_v4  ;;  %1610 = vmatpush.bf16.msra.mxu3 %v2619_v25 }
 0x13e   :  { %v4199_v26 = vpop.f32.mrf.mxu1 }
 0x13f   :  { %v1078_v19 = vadd.f32 %v4199_v26, %v1065_v10  ;;  %v2932_v26 = vld [vmem:[%s4407_s5 + $0x1e4] sm:$0xf]  ;;  %v2943_v10 = vld [vmem:[%s4409_s7 + $0x38] sm:$0xff] }
 0x140   :  { %v2965_v35 = vpop.eup %2964  ;;  %v2663_v31 = vor.u32 %v2932_v26, %v2660_v29  ;;  %v2936_v29 = vld [vmem:[%s4409_s7] sm:$0xff] }
 0x141   :  { %v4220_v39 = vpack.c.bf16 %v2965_v35, %v2965_v35  ;;  %v1038_v44 = vpop.f32.mrf.mxu2  ;;  %1649 = vmatpush.bf16.msrb.mxu2 %v2559_v30  ;;  %1611 = vmatpush.bf16.msra.mxu3 %v2611_v14  ;;  %v2652_v35 = vld [vmem:[%s4407_s5 + $0x1d8] sm:$0xf0]  ;;  %v2942_v14 = vld [vmem:[%s4409_s7 + $0x30] sm:$0xff] }
 0x142   :  { %v1051_v45 = vpop.f32.mrf.mxu3  ;;  %v1039_v48 = vadd.f32 %v1038_v44, %v1026_v38  ;;  %v2647_v44 = vor.u32 %v2928_v42, %v2644_v43 }
 0x143   :  { %1573 = vmatmul.bf16.vlgmr.msra.gmra.mxu0 %v4220_v39 }
 0x144   :  { %v1052_v53 = vadd.f32 %v1051_v45, %v1039_v48  ;;  %v1066_v54 = vpop.f32.mrf.mxu0  ;;  %v2926_v45 = vld [vmem:[%s4407_s5 + $0x1b4] sm:$0xf]  ;;  %1809 = vmatpush.bf16.msra.mxu0 %v2943_v10 }
 0x145   :  { %1650 = vmatpush.bf16.msrb.mxu2 %v2551_v21  ;;  %1656 = vmatpush.bf16.msrb.mxu3 %v2671_v27  ;;  %v2639_v50 = vor.u32 %v2926_v45, %v2636_v33  ;;  %v2628_v54 = vld [vmem:[%s4407_s5 + $0x1a8] sm:$0xf0] }
 0x146   :  { %v1079_v55 = vpop.f32.mrf.mxu1  ;;  %v1160_v62 = vpack.c.bf16 %v1052_v53, %v1052_v53  ;;  %v2924_v53 = vld [vmem:[%s4407_s5 + $0x1a4] sm:$0xf]  ;;  %v2937_v27 = vld [vmem:[%s4409_s7 + $0x8] sm:$0xff] }
 0x147   :  { %v2631_v55 = vor.u32 %v2924_v53, %v2628_v54 }
 0x148   :  { %v1164_v0 = vunpack.c.l.bf16 %v1160_v62  ;;  %1810 = vmatpush.bf16.msra.mxu0 %v2942_v14 }
 0x149   :  { %v1040_v5 = vpop.f32.mrf.mxu2  ;;  %1657 = vmatpush.bf16.msrb.mxu3 %v2663_v31  ;;  %v2947_v31 = vld [vmem:[%s4409_s7 + $0x58] sm:$0xff] }
 0x14a   :  { %v1053_v7 = vpop.f32.mrf.mxu3  ;;  %2966 = vtanh.f32 %v1164_v0 }
 0x14c   :  { %1811 = vmatpush.bf16.msra.mxu0 %v2941_v15 }
 0x150   :  { %v2967_v13 = vpop.eup %2966  ;;  %1812 = vmatpush.bf16.msra.mxu0 %v2940_v16 }
 0x151   :  { %v1172_v20 = vpack.c.bf16 %v2967_v13, %v2967_v13 }
 0x153   :  { %1625 = vmatmul.bf16.vlgmr.msrb.gmra.mxu0 %v4220_v39  ;;  %1586 = vmatmul.bf16.vlgmr.msra.gmra.mxu1 %v1172_v20  ;;  %v2655_v39 = vor.u32 %v2930_v34, %v2652_v35  ;;  %v2946_v34 = vld [vmem:[%s4409_s7 + $0x50] sm:$0xff]  ;;  %v1239_v35 = vld [vmem:[%s4408_s6] sm:$0x3] }
 0x154   :  { %v1103_v24 = vpop.f32.mrf.mxu3 }
 0x155   :  { %v1090_v23 = vpop.f32.mrf.mxu2  ;;  %1658 = vmatpush.bf16.msrb.mxu3 %v2655_v39 }
 0x156   :  { %v1091_v28 = vadd.f32 %v1090_v23, %v1078_v19  ;;  %v2939_v19 = vld [vmem:[%s4409_s7 + $0x18] sm:$0xff]  ;;  %v2938_v23 = vld [vmem:[%s4409_s7 + $0x10] sm:$0xff] }
 0x157   :  { %1813 = vmatpush.bf16.msra.mxu0 %v2939_v19 }
 0x158   :  { %v1104_v32 = vadd.f32 %v1103_v24, %v1091_v28  ;;  %v2950_v24 = vld [vmem:[%s4409_s7 + $0x70] sm:$0xff]  ;;  %v2949_v28 = vld [vmem:[%s4409_s7 + $0x68] sm:$0xff] }
 0x159   :  { %1659 = vmatpush.bf16.msrb.mxu3 %v2647_v44 }
 0x15a   :  { %v1161_v18 = vpack.c.bf16 %v1104_v32, %v1104_v32  ;;  %v2948_v32 = vld [vmem:[%s4409_s7 + $0x60] sm:$0xff] }
 0x15b   :  { %1814 = vmatpush.bf16.msra.mxu0 %v2938_v23 }
 0x15c   :  { %v1165_v36 = vunpack.c.l.bf16 %v1161_v18  ;;  %v1116_v37 = vpop.f32.mrf.mxu0  ;;  %v1129_v38 = vpop.f32.mrf.mxu1 }
 0x15d   :  { %v1092_v40 = vpop.f32.mrf.mxu2  ;;  %v1105_v41 = vpop.f32.mrf.mxu3  ;;  %1660 = vmatpush.bf16.msrb.mxu3 %v2639_v50  ;;  %v1117_v46 = vadd.f32 %v1116_v37, %v306_v58  ;;  %v2945_v37 = vld [vmem:[%s4409_s7 + $0x48] sm:$0xff] }
 0x15e   :  { %2968 = vtanh.f32 %v1165_v36  ;;  %v1241_v36 = vperm.slane %v1239_v35, 0  ;;  %v2944_v40 = vld [vmem:[%s4409_s7 + $0x40] sm:$0xff] }
 0x15f   :  { %v1130_v62 = vadd.f32 %v1129_v38, %v1117_v46  ;;  %1815 = vmatpush.bf16.msra.mxu0 %v2937_v27 }
 0x161   :  { %1661 = vmatpush.bf16.msrb.mxu3 %v2631_v55 }
 0x163   :  { %1638 = vmatmul.bf16.vlgmr.msrb.gmra.mxu1 %v1172_v20  ;;  %v2951_v20 = vld [vmem:[%s4409_s7 + $0x78] sm:$0xff]  ;;  %1816 = vmatpush.bf16.msra.mxu0 %v2936_v29 }
 0x164   :  { %v2969_v47 = vpop.eup %2968  ;;  %v1118_v48 = vpop.f32.mrf.mxu0  ;;  %1822 = vmatpush.bf16.msra.mxu1 %v2951_v20 }
 0x165   :  { %v1131_v49 = vpop.f32.mrf.mxu1  ;;  %v1173_v52 = vpack.c.bf16 %v2969_v47, %v2969_v47  ;;  %1662 = vmatpush.bf16.msrb.mxu3 %v2623_v59  ;;  %v1242_v47 = vperm.slane %v1239_v35, 1 }
 0x167   :  { %1599 = vmatmul.bf16.vlgmr.msra.gmra.mxu2 %v1173_v52 }
 0x168   :  { %1823 = vmatpush.bf16.msra.mxu1 %v2950_v24 }
 0x169   :  { %1663 = vmatpush.bf16.msrb.mxu3 %v2615_v51 }
 0x16c   :  { %1824 = vmatpush.bf16.msra.mxu1 %v2949_v28 }
 0x170   :  { %1825 = vmatpush.bf16.msra.mxu1 %v2948_v32 }
 0x173   :  { %v1142_v63 = vpop.f32.mrf.mxu2 }
 0x174   :  { %v1155_v0 = vpop.f32.mrf.mxu3  ;;  %v1143_v1 = vadd.f32 %v1142_v63, %v1130_v62  ;;  %1826 = vmatpush.bf16.msra.mxu1 %v2947_v31  ;;  %v2953_v62 = vld [vmem:[%s4410_s8] ss:$0 sm:$0xff] }
 0x176   :  { %v1156_v2 = vadd.f32 %v1155_v0, %v1143_v1  ;;  %v2954_v0 = vld [vmem:[%s4411_s9] ss:$0 sm:$0xff] }
 0x177   :  { %1651 = vmatmul.bf16.vlgmr.msrb.gmra.mxu2 %v1173_v52 }
 0x178   :  { %v1162_v6 = vpack.c.bf16 %v1156_v2, %v1156_v2  ;;  %1827 = vmatpush.bf16.msra.mxu1 %v2946_v34 }
 0x17a   :  { %v1166_v3 = vunpack.c.l.bf16 %v1162_v6  ;;  %v2955_v6 = vld [vmem:[%s4412_s10] ss:$0 sm:$0xff] }
 0x17b   :  { %v1144_v4 = vpop.f32.mrf.mxu2 }
 0x17c   :  { %v1157_v5 = vpop.f32.mrf.mxu3  ;;  %2970 = vtanh.f32 %v1166_v3  ;;  %1828 = vmatpush.bf16.msra.mxu1 %v2945_v37 }
 0x180   :  { %1829 = vmatpush.bf16.msra.mxu1 %v2944_v40 }
 0x182   :  { %v2971_v7 = vpop.eup %2970 }
 0x183   :  { %v1174_v8 = vpack.c.bf16 %v2971_v7, %v2971_v7 }
 0x185   :  { %1612 = vmatmul.bf16.vlgmr.msra.gmra.mxu3 %v1174_v8 }
 0x195   :  { %1664 = vmatmul.bf16.vlgmr.msrb.gmra.mxu3 %v1174_v8 }
 0x1c0   :  { %v1574_v9 = vpop.f32.mrf.mxu0 }
 0x1c1   :  { %v1575_v39 = vadd.f32 %v1574_v9, %v1241_v36 }
 0x1c8   :  { %v1576_v25 = vpop.f32.mrf.mxu0 }
 0x1d0   :  { %v1626_v30 = vpop.f32.mrf.mxu0  ;;  %v1587_v11 = vpop.f32.mrf.mxu1 }
 0x1d1   :  { %v1588_v41 = vadd.f32 %v1587_v11, %v1575_v39  ;;  %v1627_v49 = vadd.f32 %v1626_v30, %v1242_v47 }
 0x1d8   :  { %v1628_v12 = vpop.f32.mrf.mxu0  ;;  %v1589_v13 = vpop.f32.mrf.mxu1 }
 0x1e0   :  { %v1639_v17 = vpop.f32.mrf.mxu1 }
 0x1e1   :  { %v1640_v52 = vadd.f32 %v1639_v17, %v1627_v49 }
 0x1e8   :  { %v1641_v22 = vpop.f32.mrf.mxu1 }
 0x1ea   :  { %v1600_v21 = vpop.f32.mrf.mxu2 }
 0x1eb   :  { %v1601_v42 = vadd.f32 %v1600_v21, %v1588_v41 }
 0x1f2   :  { %v1602_v26 = vpop.f32.mrf.mxu2 }
 0x1fa   :  { %v1652_v18 = vpop.f32.mrf.mxu2 }
 0x1fb   :  { %v1653_v54 = vadd.f32 %v1652_v18, %v1640_v52 }
 0x202   :  { %v1654_v38 = vpop.f32.mrf.mxu2 }
 0x208   :  { %v1613_v43 = vpop.f32.mrf.mxu3 }
 0x209   :  { %v1614_v44 = vadd.f32 %v1613_v43, %v1601_v42 }
 0x20b   :  { %v1669_v45 = vpack.c.bf16 %v1614_v44, %v1614_v44 }
 0x20d   :  { %v1671_v33 = vunpack.c.l.bf16 %v1669_v45 }
 0x20f   :  { %2972 = vtanh.f32 %v1671_v33 }
 0x210   :  { %v1615_v48 = vpop.f32.mrf.mxu3 }
 0x215   :  { %v2973_v50 = vpop.eup %2972 }
 0x216   :  { %v1675_v53 = vpack.c.bf16 %v2973_v50, %v2973_v50 }
 0x218   :  { %v1665_v55 = vpop.f32.mrf.mxu3  ;;  %1817 = vmatmul.bf16.vlgmr.msra.gmra.mxu0 %v1675_v53 }
 0x219   :  { %v1666_v56 = vadd.f32 %v1665_v55, %v1653_v54 }
 0x21b   :  { %v1670_v57 = vpack.c.bf16 %v1666_v56, %v1666_v56 }
 0x21d   :  { %v1672_v58 = vunpack.c.l.bf16 %v1670_v57 }
 0x21f   :  { %2974 = vtanh.f32 %v1672_v58 }
 0x220   :  { %v1667_v59 = vpop.f32.mrf.mxu3 }
 0x225   :  { %v2975_v60 = vpop.eup %2974 }
 0x226   :  { %v1676_v61 = vpack.c.bf16 %v2975_v60, %v2975_v60 }
 0x228   :  { %1830 = vmatmul.bf16.vlgmr.msra.gmra.mxu1 %v1676_v61 }
 0x295   :  { %v1818_v46 = vpop.f32.mrf.mxu0 }
 0x296   :  { %v1819_v63 = vadd.f32 %v2953_v62, %v1818_v46 }
 0x29d   :  { %v1820_v51 = vpop.f32.mrf.mxu0 }
 0x2a5   :  { %v1831_v1 = vpop.f32.mrf.mxu1 }
 0x2a6   :  { %v1832_v2 = vadd.f32 %v1831_v1, %v1819_v63 }
 0x2a8   :  { %v1839_v3 = vmul.f32 %v2954_v0, %v1832_v2  ;;  %1846 = vst.msk [vmem:[#allocation2] sm:$0xff] %vm1845_vm1, %v1832_v2 }
 0x2a9   :  { %1858 = dma.vmem_to_hbm [thread:$0]  %s1854_s16, 128, %s1856_s19, [#allocation3]  }
 0x2aa   :  { %v1844_v4 = vsub.f32 %v1839_v3, %v2955_v6 }
 0x2ac   :  { %1847 = vst.msk [vmem:[%s4414_s12] sm:$0xff] %vm1845_vm1, %v1844_v4 }
 0x2ad   :  { %v1833_v5 = vpop.f32.mrf.mxu1 }
 0x2ae   :  { %3000 = dma.done.wait [#allocation3], 128  }
 0x2af   :  { %3001 = vsyncadd [#allocation3], 4294967168 }
 0x2b0   :  { %1867 = vsyncpa [#allocation3], 1 }

</bundles_post_ra>
